<compile_context>
chip_gen: v7x
topology: tpu7x:2x2x1
jax: 0.10.0
libtpu: 0.0.40
codegen_flags: <defaults>
</compile_context>

<pallas_src>
import jax
import jax.numpy as jnp
from jax.experimental import pallas as pl
from jax.experimental.pallas import tpu as pltpu

BN_EPS = 1e-5
_OUT_LANES = 128                  # lane-dense output slab width; sliced to (B, 1) outside
_VMEM_BUDGET_BYTES = 24 << 20     # conservative vs scoped-VMEM defaults on v5e/v6e/v7x


def _discriminator_kernel(
    x_ref,
    w1_ref, g1_ref, be1_ref,
    w2_ref, g2_ref, be2_ref,
    w3_ref, b3_ref,
    o_ref,
):
    x = x_ref[...]
    inv_b = 1.0 / x.shape[0]      # static batch size -> compile-time constant

    # ---- Linear 1 (MXU, bias dropped: cancels under batch-stat BN) + fused BN + ReLU
    h = jnp.dot(x, w1_ref[...], preferred_element_type=jnp.float32)
    mu = jnp.sum(h, axis=0, keepdims=True) * inv_b
    # One-pass biased variance E[h^2] - mu^2; clamp >= 0 so rsqrt can never see a
    # tiny negative from fp cancellation.
    var = jnp.maximum(jnp.sum(h * h, axis=0, keepdims=True) * inv_b - mu * mu, 0.0)
    s = g1_ref[...] * jax.lax.rsqrt(var + BN_EPS)     # rsqrt -> EUP slot
    t = be1_ref[...] - mu * s
    h = jnp.maximum(h * s + t, 0.0)

    # ---- Linear 2 (MXU) + fused BN + ReLU ----
    h = jnp.dot(h, w2_ref[...], preferred_element_type=jnp.float32)
    mu2 = jnp.sum(h, axis=0, keepdims=True) * inv_b
    var2 = jnp.maximum(jnp.sum(h * h, axis=0, keepdims=True) * inv_b - mu2 * mu2, 0.0)
    s2 = g2_ref[...] * jax.lax.rsqrt(var2 + BN_EPS)
    t2 = be2_ref[...] - mu2 * s2
    h = jnp.maximum(h * s2 + t2, 0.0)

    # ---- Linear 3 (hidden -> 1) on VPU multiply + XLU lane reduce, then sigmoid.
    z = jnp.sum(h * w3_ref[...], axis=1, keepdims=True) + b3_ref[...]      # (B, 1)
    sig = 1.0 / (1.0 + jnp.exp(-z))   # exp on EUP; exact divide on a (B,1) column
    # Lane-dense store: replicate the per-row scalar across 128 lanes so the output
    # store is an unmasked full-lane vst; the wrapper slices back to (B, 1).
    o_ref[...] = jnp.broadcast_to(sig, o_ref.shape).astype(o_ref.dtype)


def discriminator_forward(x, params):
    """x: (B, input_dim) float32. Returns (B, 1) float32 sigmoid probabilities."""
    B, input_dim = x.shape
    hidden_dim = params["w1"].shape[1]

    # Whole-batch-in-VMEM path: training-mode BN couples the entire batch, so all
    # activations stay resident. Guard against blowing the scoped VMEM budget
    # (64 MiB physical on v7x).
    f32 = 4
    vmem_bytes = f32 * (
        B * input_dim                    # x
        + input_dim * hidden_dim         # w1
        + hidden_dim * hidden_dim        # w2
        + 6 * hidden_dim                 # g1, be1, g2, be2, w3 row, slack
        + 3 * B * hidden_dim             # live activation slabs
        + B * _OUT_LANES                 # lane-dense output slab
    )
    if vmem_bytes > _VMEM_BUDGET_BYTES:
        # TODO(synk): add a batch-tiled grid with two-phase BatchNorm (per-tile
        # sum / sum-of-squares accumulation, then a normalize pass) for large B.
        raise ValueError(
            f"batch {B} too large for the all-in-VMEM path "
            f"({vmem_bytes} bytes > {_VMEM_BUDGET_BYTES} bytes)"
        )

    # NOTE: b1 / b2 are intentionally NOT passed — they cancel under batch-stat BN.
    # NOTE: for tiny per-step batches, stack multiple forward calls into one
    #       pallas_call (bigger B) to amortize launch/DMA overhead.
    operands = (
        x,
        params["w1"], params["g1"], params["be1"],
        params["w2"], params["g2"], params["be2"],
        params["w3"], params["b3"],
    )
    vmem_spec = pl.BlockSpec(memory_space=pltpu.MemorySpace.VMEM)
    out = pl.pallas_call(
        _discriminator_kernel,
        out_shape=jax.ShapeDtypeStruct((B, _OUT_LANES), jnp.float32),
        in_specs=[vmem_spec] * len(operands),
        out_specs=vmem_spec,
        compiler_params=pltpu.CompilerParams(vmem_limit_bytes=32 * 1024 * 1024),
    )(*operands)
    # Lane-dense kernel output -> (B, 1) module output.
    return out[:, :1]


def init_params(key, input_dim, hidden_dim):
    """Synthetic parameters matching the PyTorch module shapes.

    w1/w2 are stored pre-transposed as (in, out); w3 keeps PyTorch's (1, hidden)
    layout; biases / BN params are 2-D (1, out) for TPU-friendly layout. Biases and
    BN affine params are nonzero so the bias-cancellation / fused-BN math is
    actually exercised by the correctness check.
    """
    k = jax.random.split(key, 9)
    n = jax.random.normal
    return {
        "w1": n(k[0], (input_dim, hidden_dim), jnp.float32) * 0.1,
        "b1": n(k[1], (1, hidden_dim), jnp.float32) * 0.1,     # used by reference only
        "g1": 1.0 + n(k[2], (1, hidden_dim), jnp.float32) * 0.1,
        "be1": n(k[3], (1, hidden_dim), jnp.float32) * 0.1,
        "w2": n(k[4], (hidden_dim, hidden_dim), jnp.float32) * 0.1,
        "b2": n(k[5], (1, hidden_dim), jnp.float32) * 0.1,     # used by reference only
        "g2": 1.0 + n(k[6], (1, hidden_dim), jnp.float32) * 0.1,
        "be2": n(k[7], (1, hidden_dim), jnp.float32) * 0.1,
        "w3": n(k[8], (1, hidden_dim), jnp.float32) * 0.1,     # PyTorch layout (1, hidden)
        "b3": jnp.full((1, 1), 0.05, jnp.float32),
    }


def _reference_forward(x, p):
    """Pure-JAX, PyTorch-faithful reference (includes b1/b2, two-pass variance)."""
    h = x @ p["w1"] + p["b1"]
    mu = jnp.mean(h, axis=0, keepdims=True)
    var = jnp.mean((h - mu) ** 2, axis=0, keepdims=True)
    h = jnp.maximum((h - mu) / jnp.sqrt(var + BN_EPS) * p["g1"] + p["be1"], 0.0)
    h = h @ p["w2"] + p["b2"]
    mu = jnp.mean(h, axis=0, keepdims=True)
    var = jnp.mean((h - mu) ** 2, axis=0, keepdims=True)
    h = jnp.maximum((h - mu) / jnp.sqrt(var + BN_EPS) * p["g2"] + p["be2"], 0.0)
    return jax.nn.sigmoid(h @ p["w3"].T + p["b3"])


if __name__ == "__main__":
    # Module defaults: input_dim = hidden_dim = 256 (full 128-lane vregs, no padding);
    # B = 128 keeps M sublane/MXU-friendly while staying tiny in VMEM.
    B, INPUT_DIM, HIDDEN_DIM = 128, 256, 256

    key = jax.random.PRNGKey(0)
    kx, kp = jax.random.split(key)
    x = jax.random.normal(kx, (B, INPUT_DIM), jnp.float32)
    params = init_params(kp, INPUT_DIM, HIDDEN_DIM)

    out = discriminator_forward(x, params)
    out = jax.block_until_ready(out)

    ref = _reference_forward(x, params)
    assert out.shape == (B, 1), out.shape
    assert bool(jnp.all(jnp.isfinite(out))), "non-finite output"
    assert jnp.allclose(out, ref, atol=1e-5, rtol=1e-5), (
        float(jnp.max(jnp.abs(out - ref)))
    )

    print("KERNEL_OK")
</pallas_src>

<mosaic_0001>
module attributes {stable_mosaic.version = 11 : i64} {
  func.func @_discriminator_kernel(%arg0: memref<128x256xf32, #tpu.memory_space<vmem>>, %arg1: memref<256x256xf32, #tpu.memory_space<vmem>>, %arg2: memref<1x256xf32, #tpu.memory_space<vmem>>, %arg3: memref<1x256xf32, #tpu.memory_space<vmem>>, %arg4: memref<256x256xf32, #tpu.memory_space<vmem>>, %arg5: memref<1x256xf32, #tpu.memory_space<vmem>>, %arg6: memref<1x256xf32, #tpu.memory_space<vmem>>, %arg7: memref<1x256xf32, #tpu.memory_space<vmem>>, %arg8: memref<1x1xf32, #tpu.memory_space<vmem>>, %arg9: memref<128x128xf32, #tpu.memory_space<vmem>>) attributes {dimension_semantics = [], scalar_prefetch = 0 : i64, scratch_operands = 0 : i64, tpu.core_type = #tpu.core_type<tc>} {
    %c0 = arith.constant 0 : index
    %c0_0 = arith.constant 0 : index
    %0 = vector.load %arg0[%c0, %c0_0] : memref<128x256xf32, #tpu.memory_space<vmem>>, vector<128x256xf32>
    %c0_1 = arith.constant 0 : index
    %c0_2 = arith.constant 0 : index
    %1 = vector.load %arg1[%c0_1, %c0_2] : memref<256x256xf32, #tpu.memory_space<vmem>>, vector<256x256xf32>
    %cst = arith.constant dense<0.000000e+00> : vector<128x256xf32>
    %2 = tpu.matmul %0, %1, %cst {dimension_numbers = #tpu.dot_dimension_numbers<[1], [0], [0], [1], [0, 0, 1, 1], [], []>} : vector<128x256xf32>, vector<256x256xf32>, vector<128x256xf32> -> vector<128x256xf32>
    %cst_3 = arith.constant dense<0.000000e+00> : vector<256xf32>
    %3 = vector.multi_reduction <add>, %2, %cst_3 [0] : vector<128x256xf32> to vector<256xf32>
    %4 = vector.shape_cast %3 : vector<256xf32> to vector<1x256xf32>
    %cst_4 = arith.constant 7.812500e-03 : f32
    %5 = vector.broadcast %cst_4 : f32 to vector<1x256xf32>
    %6 = arith.mulf %4, %5 : vector<1x256xf32>
    %7 = arith.mulf %2, %2 : vector<128x256xf32>
    %cst_5 = arith.constant dense<0.000000e+00> : vector<256xf32>
    %8 = vector.multi_reduction <add>, %7, %cst_5 [0] : vector<128x256xf32> to vector<256xf32>
    %9 = vector.shape_cast %8 : vector<256xf32> to vector<1x256xf32>
    %cst_6 = arith.constant 7.812500e-03 : f32
    %10 = vector.broadcast %cst_6 : f32 to vector<1x256xf32>
    %11 = arith.mulf %9, %10 : vector<1x256xf32>
    %12 = arith.mulf %6, %6 : vector<1x256xf32>
    %13 = arith.subf %11, %12 : vector<1x256xf32>
    %cst_7 = arith.constant 0.000000e+00 : f32
    %14 = vector.broadcast %cst_7 : f32 to vector<1x256xf32>
    %15 = arith.maximumf %13, %14 : vector<1x256xf32>
    %c0_8 = arith.constant 0 : index
    %c0_9 = arith.constant 0 : index
    %16 = vector.load %arg2[%c0_8, %c0_9] : memref<1x256xf32, #tpu.memory_space<vmem>>, vector<1x256xf32>
    %cst_10 = arith.constant 9.99999974E-6 : f32
    %17 = vector.broadcast %cst_10 : f32 to vector<1x256xf32>
    %18 = arith.addf %15, %17 : vector<1x256xf32>
    %19 = math.rsqrt %18 : vector<1x256xf32>
    %20 = arith.mulf %16, %19 : vector<1x256xf32>
    %c0_11 = arith.constant 0 : index
    %c0_12 = arith.constant 0 : index
    %21 = vector.load %arg3[%c0_11, %c0_12] : memref<1x256xf32, #tpu.memory_space<vmem>>, vector<1x256xf32>
    %22 = arith.mulf %6, %20 : vector<1x256xf32>
    %23 = arith.subf %21, %22 : vector<1x256xf32>
    %24 = vector.broadcast %20 : vector<1x256xf32> to vector<128x256xf32>
    %25 = arith.mulf %2, %24 : vector<128x256xf32>
    %26 = vector.broadcast %23 : vector<1x256xf32> to vector<128x256xf32>
    %27 = arith.addf %25, %26 : vector<128x256xf32>
    %cst_13 = arith.constant 0.000000e+00 : f32
    %28 = vector.broadcast %cst_13 : f32 to vector<128x256xf32>
    %29 = arith.maximumf %27, %28 : vector<128x256xf32>
    %c0_14 = arith.constant 0 : index
    %c0_15 = arith.constant 0 : index
    %30 = vector.load %arg4[%c0_14, %c0_15] : memref<256x256xf32, #tpu.memory_space<vmem>>, vector<256x256xf32>
    %cst_16 = arith.constant dense<0.000000e+00> : vector<128x256xf32>
    %31 = tpu.matmul %29, %30, %cst_16 {dimension_numbers = #tpu.dot_dimension_numbers<[1], [0], [0], [1], [0, 0, 1, 1], [], []>} : vector<128x256xf32>, vector<256x256xf32>, vector<128x256xf32> -> vector<128x256xf32>
    %cst_17 = arith.constant dense<0.000000e+00> : vector<256xf32>
    %32 = vector.multi_reduction <add>, %31, %cst_17 [0] : vector<128x256xf32> to vector<256xf32>
    %33 = vector.shape_cast %32 : vector<256xf32> to vector<1x256xf32>
    %cst_18 = arith.constant 7.812500e-03 : f32
    %34 = vector.broadcast %cst_18 : f32 to vector<1x256xf32>
    %35 = arith.mulf %33, %34 : vector<1x256xf32>
    %36 = arith.mulf %31, %31 : vector<128x256xf32>
    %cst_19 = arith.constant dense<0.000000e+00> : vector<256xf32>
    %37 = vector.multi_reduction <add>, %36, %cst_19 [0] : vector<128x256xf32> to vector<256xf32>
    %38 = vector.shape_cast %37 : vector<256xf32> to vector<1x256xf32>
    %cst_20 = arith.constant 7.812500e-03 : f32
    %39 = vector.broadcast %cst_20 : f32 to vector<1x256xf32>
    %40 = arith.mulf %38, %39 : vector<1x256xf32>
    %41 = arith.mulf %35, %35 : vector<1x256xf32>
    %42 = arith.subf %40, %41 : vector<1x256xf32>
    %cst_21 = arith.constant 0.000000e+00 : f32
    %43 = vector.broadcast %cst_21 : f32 to vector<1x256xf32>
    %44 = arith.maximumf %42, %43 : vector<1x256xf32>
    %c0_22 = arith.constant 0 : index
    %c0_23 = arith.constant 0 : index
    %45 = vector.load %arg5[%c0_22, %c0_23] : memref<1x256xf32, #tpu.memory_space<vmem>>, vector<1x256xf32>
    %cst_24 = arith.constant 9.99999974E-6 : f32
    %46 = vector.broadcast %cst_24 : f32 to vector<1x256xf32>
    %47 = arith.addf %44, %46 : vector<1x256xf32>
    %48 = math.rsqrt %47 : vector<1x256xf32>
    %49 = arith.mulf %45, %48 : vector<1x256xf32>
    %c0_25 = arith.constant 0 : index
    %c0_26 = arith.constant 0 : index
    %50 = vector.load %arg6[%c0_25, %c0_26] : memref<1x256xf32, #tpu.memory_space<vmem>>, vector<1x256xf32>
    %51 = arith.mulf %35, %49 : vector<1x256xf32>
    %52 = arith.subf %50, %51 : vector<1x256xf32>
    %53 = vector.broadcast %49 : vector<1x256xf32> to vector<128x256xf32>
    %54 = arith.mulf %31, %53 : vector<128x256xf32>
    %55 = vector.broadcast %52 : vector<1x256xf32> to vector<128x256xf32>
    %56 = arith.addf %54, %55 : vector<128x256xf32>
    %cst_27 = arith.constant 0.000000e+00 : f32
    %57 = vector.broadcast %cst_27 : f32 to vector<128x256xf32>
    %58 = arith.maximumf %56, %57 : vector<128x256xf32>
    %c0_28 = arith.constant 0 : index
    %c0_29 = arith.constant 0 : index
    %59 = vector.load %arg7[%c0_28, %c0_29] : memref<1x256xf32, #tpu.memory_space<vmem>>, vector<1x256xf32>
    %60 = vector.broadcast %59 : vector<1x256xf32> to vector<128x256xf32>
    %61 = arith.mulf %58, %60 : vector<128x256xf32>
    %cst_30 = arith.constant dense<0.000000e+00> : vector<128xf32>
    %62 = vector.multi_reduction <add>, %61, %cst_30 [1] : vector<128x256xf32> to vector<128xf32>
    %63 = vector.shape_cast %62 : vector<128xf32> to vector<128x1xf32>
    %c0_31 = arith.constant 0 : index
    %c0_32 = arith.constant 0 : index
    %64 = vector.load %arg8[%c0_31, %c0_32] : memref<1x1xf32, #tpu.memory_space<vmem>>, vector<1x1xf32>
    %65 = vector.broadcast %64 : vector<1x1xf32> to vector<128x1xf32>
    %66 = arith.addf %63, %65 : vector<128x1xf32>
    %cst_33 = arith.constant 0.000000e+00 : f32
    %67 = vector.broadcast %cst_33 : f32 to vector<128x1xf32>
    %68 = arith.subf %67, %66 : vector<128x1xf32>
    %69 = math.exp %68 : vector<128x1xf32>
    %cst_34 = arith.constant 1.000000e+00 : f32
    %70 = vector.broadcast %cst_34 : f32 to vector<128x1xf32>
    %71 = arith.addf %70, %69 : vector<128x1xf32>
    %cst_35 = arith.constant 1.000000e+00 : f32
    %72 = vector.broadcast %cst_35 : f32 to vector<128x1xf32>
    %73 = arith.divf %72, %71 : vector<128x1xf32>
    %74 = vector.shape_cast %73 : vector<128x1xf32> to vector<128x1xf32>
    %75 = vector.broadcast %74 : vector<128x1xf32> to vector<128x128xf32>
    %c0_36 = arith.constant 0 : index
    %c0_37 = arith.constant 0 : index
    %76 = vector.load %arg9[%c0_36, %c0_37] : memref<128x128xf32, #tpu.memory_space<vmem>>, vector<128x128xf32>
    tpu.vector_store %arg9[%c0_36, %c0_37], %75 {strides = array<i32>} : memref<128x128xf32, #tpu.memory_space<vmem>>, vector<128x128xf32>,
    return
  }
}

</mosaic_0001>

<bundles_post_ra>
// kernel: tpu_custom_call.1
= control target key start
LH: loop header
LB: loop body
LE: loop exit
PB: predicated region body
PF: predicated region fallthrough
CT: control target
= control target key end

     0   :  { %s2466_s0 = inlined_call_operand.hbm [shape: f32[128,256], index: 0, kind: input, shape index: {}]   ;;  %s2467_s1 = inlined_call_operand.hbm [shape: f32[256,256], index: 1, kind: input, shape index: {}]   ;;  %s2468_s2 = inlined_call_operand.vmem [shape: f32[1,256], index: 2, kind: input, shape index: {}]   ;;  %s2469_s3 = inlined_call_operand.vmem [shape: f32[1,256], index: 3, kind: input, shape index: {}]   ;;  %s2470_s4 = inlined_call_operand.hbm [shape: f32[256,256], index: 4, kind: input, shape index: {}]   ;;  %s2471_s5 = inlined_call_operand.vmem [shape: f32[1,256], index: 5, kind: input, shape index: {}]   ;;  %s2472_s6 = inlined_call_operand.vmem [shape: f32[1,256], index: 6, kind: input, shape index: {}]   ;;  %s2473_s7 = inlined_call_operand.vmem [shape: f32[1,256], index: 7, kind: input, shape index: {}]   ;;  %s2474_s8 = inlined_call_operand.<no memory space> [shape: f32[1,1], index: 8, kind: input, shape index: {}]   ;;  %s2475_s9 = inlined_call_operand.hbm [shape: f32[128,128], index: 9, kind: output, shape index: {}]  }
   0x1   :  { %v14_v0 = vstv %s2474_s8 }
   0x2   :  { %15 = vst [vmem:[#allocation2] sm:$0x1] %v14_v0 }
   0x3   :  { %16 = vsyncpa [#allocation4], 0 }
   0x4   :  { %17 = vsyncpa [#allocation7], 0 }
   0x5   :  { %18 = vsyncpa [#allocation5], 0  ;;  %s1770_s11 = smov [#allocation6]   ;;  %s1771_s13 = smov [#allocation3]  }
   0x6   :  { %s36_s12 = sshll.u32 %s1770_s11, 4  ;;  %s24_s14 = sshll.u32 %s1771_s13, 4  ;;  %s37_s12 = int_to_ptr.vmem [resolvable:$true] %s36_s12  ;;  %s1833_s14 = int_to_ptr.vmem [resolvable:$true] %s24_s14 }
   0x7   :  { %s1676_s17 = scalar_lea.hbm %s2467_s1, 8192 }
   0x8   :  { %p1677_p0 = scmp.ne.s32.totalorder %s2467_s1, %s1676_s17  ;;  %p1680_p1 = scmp.lt.u32.totalorder %s1676_s17, %s2467_s1 }
   0xa   :  { %p1682_p2 = pnand %p1680_p1, %p1677_p0 }
   0xc   :  { %1685 = shalt.err (!%p1682_p2)
}
   0xd   :  { %s1686_s21 = scalar_lea.vmem %s37_s12, 8192  ;;  %p1691_p4 = scmp.lt.s32.totalorder %s37_s12, %s37_s12 }
   0xe   :  { %p1687_p3 = scmp.ne.s32.totalorder %s37_s12, %s1686_s21  ;;  %p1692_p5 = scmp.lt.s32.totalorder %s1686_s21, %s1686_s21 }
  0x10   :  { %p1693_p6 = por %p1692_p5, %p1691_p4 }
  0x12   :  { %p1694_p7 = pnand %p1693_p6, %p1687_p3 }
  0x14   :  { %1697 = shalt.err (!%p1694_p7)
}
  0x15   :  { %s1772_s22 = smov 256   ;;  %s1773_s23 = smov 16  }
  0x16   :  { %42 = dma.hbm_to_vmem [thread:$0]  %s2467_s1, 8192, %s37_s12, [#allocation7], %s1772_s22, %s1772_s22, %s1773_s23  }
  0x17   :  { %s1698_s28 = scalar_lea.hbm %s2466_s0, 4096 }
  0x18   :  { %p1699_p8 = scmp.ne.s32.totalorder %s2466_s0, %s1698_s28  ;;  %p1702_p9 = scmp.lt.u32.totalorder %s1698_s28, %s2466_s0 }
  0x1a   :  { %p1704_p10 = pnand %p1702_p9, %p1699_p8 }
  0x1c   :  { %1707 = shalt.err (!%p1704_p10)
}
  0x1d   :  { %s1708_s13 = scalar_lea.vmem %s1833_s14, 4096  ;;  %p1713_p12 = scmp.lt.s32.totalorder %s1833_s14, %s1833_s14 }
  0x1e   :  { %p1709_p11 = scmp.ne.s32.totalorder %s1833_s14, %s1708_s13  ;;  %p1714_p13 = scmp.lt.s32.totalorder %s1708_s13, %s1708_s13 }
  0x20   :  { %p1715_p0 = por %p1714_p13, %p1713_p12 }
  0x22   :  { %p1716_p1 = pnand %p1715_p0, %p1709_p11 }
  0x24   :  { %1719 = shalt.err (!%p1716_p1)
}
  0x25   :  { %30 = dma.hbm_to_vmem [thread:$0]  %s2466_s0, 4096, %s1833_s14, [#allocation4], %s1772_s22, %s1772_s22, %s1773_s23  }
  0x26   :  { %s1774_s15 = smov [#allocation8]   ;;  %s1720_s19 = scalar_lea.hbm %s2470_s4, 8192 }
  0x27   :  { %s52_s16 = sshll.u32 %s1774_s15, 4  ;;  %p1721_p2 = scmp.ne.s32.totalorder %s2470_s4, %s1720_s19  ;;  %s53_s16 = int_to_ptr.vmem [resolvable:$true] %s52_s16 }
  0x28   :  { %p1724_p3 = scmp.lt.u32.totalorder %s1720_s19, %s2470_s4 }
  0x2a   :  { %p1726_p4 = pnand %p1724_p3, %p1721_p2 }
  0x2c   :  { %1729 = shalt.err (!%p1726_p4)
}
  0x2d   :  { %s1730_s25 = scalar_lea.vmem %s53_s16, 8192  ;;  %p1735_p6 = scmp.lt.s32.totalorder %s53_s16, %s53_s16 }
  0x2e   :  { %p1731_p5 = scmp.ne.s32.totalorder %s53_s16, %s1730_s25  ;;  %p1736_p7 = scmp.lt.s32.totalorder %s1730_s25, %s1730_s25 }
  0x30   :  { %p1737_p8 = por %p1736_p7, %p1735_p6 }
  0x32   :  { %p1738_p9 = pnand %p1737_p8, %p1731_p5 }
  0x34   :  { %1741 = shalt.err (!%p1738_p9)
}
  0x35   :  { %58 = dma.hbm_to_vmem [thread:$0]  %s2470_s4, 8192, %s53_s16, [#allocation7], %s1772_s22, %s1772_s22, %s1773_s23  }
  0x36   :  { %1764 = dma.done.wait [#allocation4], 4096  }
  0x37   :  { %1765 = vsyncadd [#allocation4], 4294963200 }
  0x38   :  { %1766 = dma.done.wait [#allocation7], 16384  }
  0x39   :  { %1767 = vsyncadd [#allocation7], 4294950912  ;;  %v109_v1 = vld [vmem:[#allocation6 + $0x8] sm:$0xff]  ;;  %v111_v2 = vld [vmem:[#allocation6 + $0x18] sm:$0xff] }
  0x3a   :  { %v108_v3 = vld [vmem:[#allocation6] sm:$0xff]  ;;  %v1464_v4 = vpack.c.bf16 %v111_v2, %v109_v1  ;;  %v110_v5 = vld [vmem:[#allocation6 + $0x10] sm:$0xff]  ;;  %v113_v6 = vld [vmem:[#allocation6 + $0x28] sm:$0xff] }
  0x3b   :  { %v115_v7 = vld [vmem:[#allocation6 + $0x38] sm:$0xff]  ;;  %v1466_v8 = vpack.c.bf16 %v110_v5, %v108_v3  ;;  %v112_v10 = vld [vmem:[#allocation6 + $0x20] sm:$0xff]  ;;  %v114_v11 = vld [vmem:[#allocation6 + $0x30] sm:$0xff] }
  0x3c   :  { %v1468_v9 = vpack.c.bf16 %v115_v7, %v113_v6  ;;  %v117_v12 = vld [vmem:[#allocation6 + $0x48] sm:$0xff]  ;;  %1465 = vmatprep.subr.bf16.mxu0 %v1464_v4  ;;  %v119_v13 = vld [vmem:[#allocation6 + $0x58] sm:$0xff]  ;;  %v1470_v14 = vpack.c.bf16 %v114_v11, %v112_v10  ;;  %v116_v16 = vld [vmem:[#allocation6 + $0x40] sm:$0xff] }
  0x3d   :  { %1467 = vmatpush1.bf16.msra.mxu0 %v1466_v8  ;;  %v1472_v15 = vpack.c.bf16 %v119_v13, %v117_v12  ;;  %v118_v17 = vld [vmem:[#allocation6 + $0x50] sm:$0xff]  ;;  %v121_v18 = vld [vmem:[#allocation6 + $0x68] sm:$0xff]  ;;  %v123_v19 = vld [vmem:[#allocation6 + $0x78] sm:$0xff] }
  0x3e   :  { %1469 = vmatprep.subr.bf16.mxu0 %v1468_v9  ;;  %v1474_v20 = vpack.c.bf16 %v118_v17, %v116_v16  ;;  %v1476_v21 = vpack.c.bf16 %v123_v19, %v121_v18  ;;  %v120_v22 = vld [vmem:[#allocation6 + $0x60] sm:$0xff]  ;;  %v122_v23 = vld [vmem:[#allocation6 + $0x70] sm:$0xff]  ;;  %v125_v24 = vld [vmem:[#allocation6 + $0x88] sm:$0xff] }
  0x3f   :  { %v127_v25 = vld [vmem:[#allocation6 + $0x98] sm:$0xff]  ;;  %v1478_v26 = vpack.c.bf16 %v122_v23, %v120_v22  ;;  %v124_v28 = vld [vmem:[#allocation6 + $0x80] sm:$0xff]  ;;  %v126_v29 = vld [vmem:[#allocation6 + $0x90] sm:$0xff] }
  0x40   :  { %v1480_v27 = vpack.c.bf16 %v127_v25, %v125_v24  ;;  %v129_v30 = vld [vmem:[#allocation6 + $0xa8] sm:$0xff]  ;;  %v131_v31 = vld [vmem:[#allocation6 + $0xb8] sm:$0xff]  ;;  %v1482_v32 = vpack.c.bf16 %v126_v29, %v124_v28  ;;  %v128_v34 = vld [vmem:[#allocation6 + $0xa0] sm:$0xff] }
  0x41   :  { %1471 = vmatpush1.bf16.msra.mxu0 %v1470_v14  ;;  %v1484_v33 = vpack.c.bf16 %v131_v31, %v129_v30  ;;  %v130_v35 = vld [vmem:[#allocation6 + $0xb0] sm:$0xff]  ;;  %v133_v36 = vld [vmem:[#allocation6 + $0xc8] sm:$0xff]  ;;  %v135_v37 = vld [vmem:[#allocation6 + $0xd8] sm:$0xff] }
  0x42   :  { %1473 = vmatprep.subr.bf16.mxu0 %v1472_v15  ;;  %v1486_v38 = vpack.c.bf16 %v130_v35, %v128_v34  ;;  %v1488_v39 = vpack.c.bf16 %v135_v37, %v133_v36  ;;  %v132_v40 = vld [vmem:[#allocation6 + $0xc0] sm:$0xff]  ;;  %v134_v41 = vld [vmem:[#allocation6 + $0xd0] sm:$0xff]  ;;  %v77_v42 = vld [vmem:[#allocation3 + $0x8] sm:$0xff] }
  0x43   :  { %v137_v43 = vld [vmem:[#allocation6 + $0xe8] sm:$0xff]  ;;  %v139_v44 = vld [vmem:[#allocation6 + $0xf8] sm:$0xff]  ;;  %236 = vmatprep.mubr.f32.mxu0 %v77_v42  ;;  %v1490_v45 = vpack.c.bf16 %v134_v41, %v132_v40  ;;  %v136_v47 = vld [vmem:[#allocation6 + $0xe0] sm:$0xff] }
  0x44   :  { %v1492_v46 = vpack.c.bf16 %v139_v44, %v137_v43  ;;  %v138_v48 = vld [vmem:[#allocation6 + $0xf0] sm:$0xff]  ;;  %v141_v49 = vld [vmem:[#allocation6 + $0x108] sm:$0xff]  ;;  %v143_v50 = vld [vmem:[#allocation6 + $0x118] sm:$0xff] }
  0x45   :  { %1475 = vmatpush1.bf16.msra.mxu0 %v1474_v20  ;;  %v1494_v51 = vpack.c.bf16 %v138_v48, %v136_v47  ;;  %v1496_v52 = vpack.c.bf16 %v143_v50, %v141_v49  ;;  %v140_v53 = vld [vmem:[#allocation6 + $0x100] sm:$0xff]  ;;  %v142_v54 = vld [vmem:[#allocation6 + $0x110] sm:$0xff]  ;;  %v145_v55 = vld [vmem:[#allocation6 + $0x128] sm:$0xff] }
  0x46   :  { %1477 = vmatprep.subr.bf16.mxu0 %v1476_v21  ;;  %v147_v56 = vld [vmem:[#allocation6 + $0x138] sm:$0xff]  ;;  %v1498_v57 = vpack.c.bf16 %v142_v54, %v140_v53  ;;  %v144_v59 = vld [vmem:[#allocation6 + $0x120] sm:$0xff]  ;;  %v146_v60 = vld [vmem:[#allocation6 + $0x130] sm:$0xff] }
  0x47   :  { %v1500_v58 = vpack.c.bf16 %v147_v56, %v145_v55  ;;  %v149_v61 = vld [vmem:[#allocation6 + $0x148] sm:$0xff]  ;;  %v151_v62 = vld [vmem:[#allocation6 + $0x158] sm:$0xff]  ;;  %v1502_v63 = vpack.c.bf16 %v146_v60, %v144_v59  ;;  %v148_v1 = vld [vmem:[#allocation6 + $0x140] sm:$0xff] }
  0x48   :  { %v1504_v0 = vpack.c.bf16 %v151_v62, %v149_v61  ;;  %v150_v2 = vld [vmem:[#allocation6 + $0x150] sm:$0xff]  ;;  %v153_v3 = vld [vmem:[#allocation6 + $0x168] sm:$0xff]  ;;  %v155_v4 = vld [vmem:[#allocation6 + $0x178] sm:$0xff] }
  0x49   :  { %1479 = vmatpush1.bf16.msra.mxu0 %v1478_v26  ;;  %v1506_v5 = vpack.c.bf16 %v150_v2, %v148_v1  ;;  %v1508_v6 = vpack.c.bf16 %v155_v4, %v153_v3  ;;  %v152_v7 = vld [vmem:[#allocation6 + $0x160] sm:$0xff]  ;;  %v154_v8 = vld [vmem:[#allocation6 + $0x170] sm:$0xff]  ;;  %v157_v9 = vld [vmem:[#allocation6 + $0x188] sm:$0xff] }
  0x4a   :  { %1481 = vmatprep.subr.bf16.mxu0 %v1480_v27  ;;  %v159_v10 = vld [vmem:[#allocation6 + $0x198] sm:$0xff]  ;;  %v1510_v11 = vpack.c.bf16 %v154_v8, %v152_v7  ;;  %v156_v13 = vld [vmem:[#allocation6 + $0x180] sm:$0xff]  ;;  %v158_v14 = vld [vmem:[#allocation6 + $0x190] sm:$0xff] }
  0x4b   :  { %v1512_v12 = vpack.c.bf16 %v159_v10, %v157_v9  ;;  %v161_v15 = vld [vmem:[#allocation6 + $0x1a8] sm:$0xff]  ;;  %v163_v16 = vld [vmem:[#allocation6 + $0x1b8] sm:$0xff]  ;;  %v1514_v17 = vpack.c.bf16 %v158_v14, %v156_v13  ;;  %v160_v19 = vld [vmem:[#allocation6 + $0x1a0] sm:$0xff] }
  0x4c   :  { %v1516_v18 = vpack.c.bf16 %v163_v16, %v161_v15  ;;  %v162_v20 = vld [vmem:[#allocation6 + $0x1b0] sm:$0xff]  ;;  %v165_v21 = vld [vmem:[#allocation6 + $0x1c8] sm:$0xff]  ;;  %v167_v22 = vld [vmem:[#allocation6 + $0x1d8] sm:$0xff] }
  0x4d   :  { %1483 = vmatpush1.bf16.msra.mxu0 %v1482_v32  ;;  %v1518_v23 = vpack.c.bf16 %v162_v20, %v160_v19  ;;  %v1520_v24 = vpack.c.bf16 %v167_v22, %v165_v21  ;;  %v164_v25 = vld [vmem:[#allocation6 + $0x1c0] sm:$0xff]  ;;  %v166_v26 = vld [vmem:[#allocation6 + $0x1d0] sm:$0xff]  ;;  %v169_v27 = vld [vmem:[#allocation6 + $0x1e8] sm:$0xff] }
  0x4e   :  { %1485 = vmatprep.subr.bf16.mxu0 %v1484_v33  ;;  %v171_v28 = vld [vmem:[#allocation6 + $0x1f8] sm:$0xff]  ;;  %v1522_v29 = vpack.c.bf16 %v166_v26, %v164_v25  ;;  %v168_v31 = vld [vmem:[#allocation6 + $0x1e0] sm:$0xff]  ;;  %v170_v32 = vld [vmem:[#allocation6 + $0x1f0] sm:$0xff] }
  0x4f   :  { %v1524_v30 = vpack.c.bf16 %v171_v28, %v169_v27  ;;  %v1526_v33 = vpack.c.bf16 %v170_v32, %v168_v31  ;;  %v76_v34 = vld [vmem:[#allocation3] sm:$0xff]  ;;  %v79_v35 = vld [vmem:[#allocation3 + $0x18] sm:$0xff]  ;;  %v78_v36 = vld [vmem:[#allocation3 + $0x10] sm:$0xff] }
  0x50   :  { %v81_v37 = vld [vmem:[#allocation3 + $0x28] sm:$0xff]  ;;  %v82_v40 = vld [vmem:[#allocation3 + $0x30] sm:$0xff]  ;;  %v84_v42 = vld [vmem:[#allocation3 + $0x40] sm:$0xff] }
  0x51   :  { %1487 = vmatpush1.bf16.msra.mxu0 %v1486_v38  ;;  %v80_v38 = vld [vmem:[#allocation3 + $0x20] sm:$0xff]  ;;  %v85_v41 = vld [vmem:[#allocation3 + $0x48] sm:$0xff]  ;;  %v87_v43 = vld [vmem:[#allocation3 + $0x58] sm:$0xff] }
  0x52   :  { %1489 = vmatprep.subr.bf16.mxu0 %v1488_v39  ;;  %v83_v39 = vld [vmem:[#allocation3 + $0x38] sm:$0xff]  ;;  %v86_v44 = vld [vmem:[#allocation3 + $0x50] sm:$0xff]  ;;  %v93_v49 = vld [vmem:[#allocation3 + $0x88] sm:$0xff] }
  0x53   :  { %v91_v47 = vld [vmem:[#allocation3 + $0x78] sm:$0xff]  ;;  %v90_v48 = vld [vmem:[#allocation3 + $0x70] sm:$0xff]  ;;  %v92_v50 = vld [vmem:[#allocation3 + $0x80] sm:$0xff] }
  0x54   :  { %v97_v53 = vld [vmem:[#allocation3 + $0xa8] sm:$0xff]  ;;  %v96_v54 = vld [vmem:[#allocation3 + $0xa0] sm:$0xff]  ;;  %v99_v55 = vld [vmem:[#allocation3 + $0xb8] sm:$0xff] }
  0x55   :  { %1491 = vmatpush1.bf16.msra.mxu0 %v1490_v45  ;;  %v89_v45 = vld [vmem:[#allocation3 + $0x68] sm:$0xff]  ;;  %v98_v56 = vld [vmem:[#allocation3 + $0xb0] sm:$0xff]  ;;  %v103_v59 = vld [vmem:[#allocation3 + $0xd8] sm:$0xff] }
  0x56   :  { %1493 = vmatprep.subr.bf16.mxu0 %v1492_v46  ;;  %v88_v46 = vld [vmem:[#allocation3 + $0x60] sm:$0xff]  ;;  %v102_v60 = vld [vmem:[#allocation3 + $0xd0] sm:$0xff]  ;;  %v105_v61 = vld [vmem:[#allocation3 + $0xe8] sm:$0xff] }
  0x57   :  { %v104_v62 = vld [vmem:[#allocation3 + $0xe0] sm:$0xff]  ;;  %v624_v1 = vld [vmem:[#allocation8 + $0x8] sm:$0xff]  ;;  %v626_v2 = vld [vmem:[#allocation8 + $0x18] sm:$0xff] }
  0x58   :  { %v1528_v3 = vpack.c.bf16 %v626_v2, %v624_v1  ;;  %v623_v4 = vld [vmem:[#allocation8] sm:$0xff]  ;;  %v628_v7 = vld [vmem:[#allocation8 + $0x28] sm:$0xff]  ;;  %v630_v8 = vld [vmem:[#allocation8 + $0x38] sm:$0xff] }
  0x59   :  { %1495 = vmatpush1.bf16.msra.mxu0 %v1494_v51  ;;  %v95_v51 = vld [vmem:[#allocation3 + $0x98] sm:$0xff]  ;;  %v1532_v9 = vpack.c.bf16 %v630_v8, %v628_v7  ;;  %v627_v10 = vld [vmem:[#allocation8 + $0x20] sm:$0xff]  ;;  %v632_v13 = vld [vmem:[#allocation8 + $0x48] sm:$0xff] }
  0x5a   :  { %1497 = vmatprep.subr.bf16.mxu0 %v1496_v52  ;;  %v94_v52 = vld [vmem:[#allocation3 + $0x90] sm:$0xff]  ;;  %1529 = vmatprep.subr.bf16.mxu1 %v1528_v3  ;;  %v634_v14 = vld [vmem:[#allocation8 + $0x58] sm:$0xff]  ;;  %v631_v16 = vld [vmem:[#allocation8 + $0x40] sm:$0xff] }
  0x5b   :  { %v1536_v15 = vpack.c.bf16 %v634_v14, %v632_v13  ;;  %v636_v19 = vld [vmem:[#allocation8 + $0x68] sm:$0xff]  ;;  %v638_v20 = vld [vmem:[#allocation8 + $0x78] sm:$0xff]  ;;  %v635_v22 = vld [vmem:[#allocation8 + $0x60] sm:$0xff] }
  0x5c   :  { %v1540_v21 = vpack.c.bf16 %v638_v20, %v636_v19  ;;  %v640_v25 = vld [vmem:[#allocation8 + $0x88] sm:$0xff]  ;;  %v642_v26 = vld [vmem:[#allocation8 + $0x98] sm:$0xff]  ;;  %v639_v28 = vld [vmem:[#allocation8 + $0x80] sm:$0xff] }
  0x5d   :  { %1499 = vmatpush1.bf16.msra.mxu0 %v1498_v57  ;;  %v101_v57 = vld [vmem:[#allocation3 + $0xc8] sm:$0xff]  ;;  %v1544_v27 = vpack.c.bf16 %v642_v26, %v640_v25  ;;  %v646_v32 = vld [vmem:[#allocation8 + $0xb8] sm:$0xff]  ;;  %v665_v1 = vld [vmem:[#allocation8 + $0x150] sm:$0xff] }
  0x5e   :  { %1501 = vmatprep.subr.bf16.mxu0 %v1500_v58  ;;  %v100_v58 = vld [vmem:[#allocation3 + $0xc0] sm:$0xff]  ;;  %v644_v31 = vld [vmem:[#allocation8 + $0xa8] sm:$0xff]  ;;  %v669_v7 = vld [vmem:[#allocation8 + $0x170] sm:$0xff] }
  0x5f   :  { %v668_v3 = vld [vmem:[#allocation8 + $0x168] sm:$0xff]  ;;  %v673_v13 = vld [vmem:[#allocation8 + $0x190] sm:$0xff] }
  0x60   :  { %v677_v19 = vld [vmem:[#allocation8 + $0x1b0] sm:$0xff] }
  0x61   :  { %1503 = vmatpush1.bf16.msra.mxu0 %v1502_v63  ;;  %v107_v63 = vld [vmem:[#allocation3 + $0xf8] sm:$0xff]  ;;  %v681_v25 = vld [vmem:[#allocation8 + $0x1d0] sm:$0xff] }
  0x62   :  { %1505 = vmatprep.subr.bf16.mxu0 %v1504_v0  ;;  %v106_v0 = vld [vmem:[#allocation3 + $0xf0] sm:$0xff] }
  0x65   :  { %1507 = vmatpush1.bf16.msra.mxu0 %v1506_v5  ;;  %v625_v5 = vld [vmem:[#allocation8 + $0x10] sm:$0xff] }
  0x66   :  { %1509 = vmatprep.subr.bf16.mxu0 %v1508_v6  ;;  %v1530_v6 = vpack.c.bf16 %v625_v5, %v623_v4  ;;  %v670_v4 = vld [vmem:[#allocation8 + $0x178] sm:$0xff] }
  0x67   :  { %v1572_v5 = vpack.c.bf16 %v670_v4, %v668_v3 }
  0x68   :  { %1531 = vmatpush1.bf16.msra.mxu1 %v1530_v6  ;;  %v667_v6 = vld [vmem:[#allocation8 + $0x160] sm:$0xff] }
  0x69   :  { %1511 = vmatpush1.bf16.msra.mxu0 %v1510_v11  ;;  %v629_v11 = vld [vmem:[#allocation8 + $0x30] sm:$0xff]  ;;  %1533 = vmatprep.subr.bf16.mxu1 %v1532_v9  ;;  %v1574_v8 = vpack.c.bf16 %v669_v7, %v667_v6  ;;  %v672_v9 = vld [vmem:[#allocation8 + $0x188] sm:$0xff] }
  0x6a   :  { %1513 = vmatprep.subr.bf16.mxu0 %v1512_v12  ;;  %v1534_v12 = vpack.c.bf16 %v629_v11, %v627_v10  ;;  %v674_v10 = vld [vmem:[#allocation8 + $0x198] sm:$0xff] }
  0x6b   :  { %v1576_v11 = vpack.c.bf16 %v674_v10, %v672_v9 }
  0x6c   :  { %1535 = vmatpush1.bf16.msra.mxu1 %v1534_v12  ;;  %v671_v12 = vld [vmem:[#allocation8 + $0x180] sm:$0xff] }
  0x6d   :  { %1515 = vmatpush1.bf16.msra.mxu0 %v1514_v17  ;;  %v633_v17 = vld [vmem:[#allocation8 + $0x50] sm:$0xff]  ;;  %1537 = vmatprep.subr.bf16.mxu1 %v1536_v15  ;;  %v1578_v14 = vpack.c.bf16 %v673_v13, %v671_v12  ;;  %v676_v15 = vld [vmem:[#allocation8 + $0x1a8] sm:$0xff] }
  0x6e   :  { %1517 = vmatprep.subr.bf16.mxu0 %v1516_v18  ;;  %v1538_v18 = vpack.c.bf16 %v633_v17, %v631_v16  ;;  %v678_v16 = vld [vmem:[#allocation8 + $0x1b8] sm:$0xff] }
  0x6f   :  { %v1580_v17 = vpack.c.bf16 %v678_v16, %v676_v15 }
  0x70   :  { %1539 = vmatpush1.bf16.msra.mxu1 %v1538_v18  ;;  %v675_v18 = vld [vmem:[#allocation8 + $0x1a0] sm:$0xff] }
  0x71   :  { %1519 = vmatpush1.bf16.msra.mxu0 %v1518_v23  ;;  %v637_v23 = vld [vmem:[#allocation8 + $0x70] sm:$0xff]  ;;  %1541 = vmatprep.subr.bf16.mxu1 %v1540_v21  ;;  %v1582_v20 = vpack.c.bf16 %v677_v19, %v675_v18  ;;  %v680_v21 = vld [vmem:[#allocation8 + $0x1c8] sm:$0xff] }
  0x72   :  { %1521 = vmatprep.subr.bf16.mxu0 %v1520_v24  ;;  %v1542_v24 = vpack.c.bf16 %v637_v23, %v635_v22  ;;  %v682_v22 = vld [vmem:[#allocation8 + $0x1d8] sm:$0xff] }
  0x73   :  { %v1584_v23 = vpack.c.bf16 %v682_v22, %v680_v21 }
  0x74   :  { %1543 = vmatpush1.bf16.msra.mxu1 %v1542_v24  ;;  %v679_v24 = vld [vmem:[#allocation8 + $0x1c0] sm:$0xff] }
  0x75   :  { %1523 = vmatpush1.bf16.msra.mxu0 %v1522_v29  ;;  %v641_v29 = vld [vmem:[#allocation8 + $0x90] sm:$0xff]  ;;  %1545 = vmatprep.subr.bf16.mxu1 %v1544_v27  ;;  %v1586_v26 = vpack.c.bf16 %v681_v25, %v679_v24  ;;  %v684_v27 = vld [vmem:[#allocation8 + $0x1e8] sm:$0xff] }
  0x76   :  { %1525 = vmatprep.subr.bf16.mxu0 %v1524_v30  ;;  %v1546_v30 = vpack.c.bf16 %v641_v29, %v639_v28  ;;  %v686_v28 = vld [vmem:[#allocation8 + $0x1f8] sm:$0xff] }
  0x77   :  { %v1588_v29 = vpack.c.bf16 %v686_v28, %v684_v27 }
  0x78   :  { %1547 = vmatpush1.bf16.msra.mxu1 %v1546_v30  ;;  %v683_v30 = vld [vmem:[#allocation8 + $0x1e0] sm:$0xff] }
  0x79   :  { %1527 = vmatpush1.bf16.msra.mxu0 %v1526_v33  ;;  %v1548_v33 = vpack.c.bf16 %v646_v32, %v644_v31  ;;  %v685_v31 = vld [vmem:[#allocation8 + $0x1f0] sm:$0xff] }
  0x7a   :  { %v1590_v32 = vpack.c.bf16 %v685_v31, %v683_v30 }
  0x7b   :  { %1549 = vmatprep.subr.bf16.mxu1 %v1548_v33 }
  0x7c   :  { %237 = vmatmul.mubr.f32.vlgmr.msra.gmra.mrb[0].mxu0 %v76_v34  ;;  %v643_v34 = vld [vmem:[#allocation8 + $0xa0] sm:$0xff] }
  0x7d   :  { %242 = vmatprep.mubr.f32.mxu0 %v79_v35  ;;  %v645_v35 = vld [vmem:[#allocation8 + $0xb0] sm:$0xff] }
  0x80   :  { %243 = vmatmul.mubr.f32.gmra.mrb[2].mxu0 %v78_v36  ;;  %v1550_v36 = vpack.c.bf16 %v645_v35, %v643_v34 }
  0x81   :  { %248 = vmatprep.mubr.f32.mxu0 %v81_v37  ;;  %v648_v37 = vld [vmem:[#allocation8 + $0xc8] sm:$0xff] }
  0x82   :  { %1551 = vmatpush1.bf16.msra.mxu1 %v1550_v36 }
  0x84   :  { %249 = vmatmul.mubr.f32.gmra.mrb[4].mxu0 %v80_v38  ;;  %v650_v38 = vld [vmem:[#allocation8 + $0xd8] sm:$0xff] }
  0x85   :  { %254 = vmatprep.mubr.f32.mxu0 %v83_v39  ;;  %v1552_v39 = vpack.c.bf16 %v650_v38, %v648_v37 }
  0x87   :  { %1553 = vmatprep.subr.bf16.mxu1 %v1552_v39 }
  0x88   :  { %255 = vmatmul.mubr.f32.gmra.mrb[6].mxu0 %v82_v40  ;;  %v647_v40 = vld [vmem:[#allocation8 + $0xc0] sm:$0xff] }
  0x89   :  { %260 = vmatprep.mubr.f32.mxu0 %v85_v41  ;;  %v649_v41 = vld [vmem:[#allocation8 + $0xd0] sm:$0xff] }
  0x8c   :  { %261 = vmatmul.mubr.f32.gmra.mrb[8].mxu0 %v84_v42  ;;  %v1554_v42 = vpack.c.bf16 %v649_v41, %v647_v40 }
  0x8d   :  { %266 = vmatprep.mubr.f32.mxu0 %v87_v43  ;;  %v652_v43 = vld [vmem:[#allocation8 + $0xe8] sm:$0xff] }
  0x8e   :  { %1555 = vmatpush1.bf16.msra.mxu1 %v1554_v42 }
  0x90   :  { %267 = vmatmul.mubr.f32.gmra.mrb[10].mxu0 %v86_v44  ;;  %v654_v44 = vld [vmem:[#allocation8 + $0xf8] sm:$0xff] }
  0x91   :  { %272 = vmatprep.mubr.f32.mxu0 %v89_v45  ;;  %v1556_v45 = vpack.c.bf16 %v654_v44, %v652_v43 }
  0x93   :  { %1557 = vmatprep.subr.bf16.mxu1 %v1556_v45 }
  0x94   :  { %273 = vmatmul.mubr.f32.gmra.mrb[12].mxu0 %v88_v46  ;;  %v651_v46 = vld [vmem:[#allocation8 + $0xe0] sm:$0xff] }
  0x95   :  { %278 = vmatprep.mubr.f32.mxu0 %v91_v47  ;;  %v653_v47 = vld [vmem:[#allocation8 + $0xf0] sm:$0xff] }
  0x98   :  { %279 = vmatmul.mubr.f32.gmra.mrb[14].mxu0 %v90_v48  ;;  %v1558_v48 = vpack.c.bf16 %v653_v47, %v651_v46 }
  0x99   :  { %284 = vmatprep.mubr.f32.mxu0 %v93_v49  ;;  %v656_v49 = vld [vmem:[#allocation8 + $0x108] sm:$0xff] }
  0x9a   :  { %1559 = vmatpush1.bf16.msra.mxu1 %v1558_v48 }
  0x9c   :  { %285 = vmatmul.mubr.f32.gmra.mrb[16].mxu0 %v92_v50  ;;  %v658_v50 = vld [vmem:[#allocation8 + $0x118] sm:$0xff] }
  0x9d   :  { %290 = vmatprep.mubr.f32.mxu0 %v95_v51  ;;  %v1560_v51 = vpack.c.bf16 %v658_v50, %v656_v49 }
  0x9f   :  { %1561 = vmatprep.subr.bf16.mxu1 %v1560_v51 }
  0xa0   :  { %291 = vmatmul.mubr.f32.gmra.mrb[18].mxu0 %v94_v52  ;;  %v655_v52 = vld [vmem:[#allocation8 + $0x100] sm:$0xff] }
  0xa1   :  { %296 = vmatprep.mubr.f32.mxu0 %v97_v53  ;;  %v657_v53 = vld [vmem:[#allocation8 + $0x110] sm:$0xff] }
  0xa4   :  { %297 = vmatmul.mubr.f32.gmra.mrb[20].mxu0 %v96_v54  ;;  %v1562_v54 = vpack.c.bf16 %v657_v53, %v655_v52 }
  0xa5   :  { %302 = vmatprep.mubr.f32.mxu0 %v99_v55  ;;  %v660_v55 = vld [vmem:[#allocation8 + $0x128] sm:$0xff] }
  0xa6   :  { %1563 = vmatpush1.bf16.msra.mxu1 %v1562_v54 }
  0xa8   :  { %303 = vmatmul.mubr.f32.gmra.mrb[22].mxu0 %v98_v56  ;;  %v662_v56 = vld [vmem:[#allocation8 + $0x138] sm:$0xff] }
  0xa9   :  { %308 = vmatprep.mubr.f32.mxu0 %v101_v57  ;;  %v1564_v57 = vpack.c.bf16 %v662_v56, %v660_v55 }
  0xab   :  { %1565 = vmatprep.subr.bf16.mxu1 %v1564_v57 }
  0xac   :  { %309 = vmatmul.mubr.f32.gmra.mrb[24].mxu0 %v100_v58  ;;  %v659_v58 = vld [vmem:[#allocation8 + $0x120] sm:$0xff] }
  0xad   :  { %314 = vmatprep.mubr.f32.mxu0 %v103_v59  ;;  %v661_v59 = vld [vmem:[#allocation8 + $0x130] sm:$0xff] }
  0xb0   :  { %315 = vmatmul.mubr.f32.gmra.mrb[26].mxu0 %v102_v60  ;;  %v1566_v60 = vpack.c.bf16 %v661_v59, %v659_v58 }
  0xb1   :  { %320 = vmatprep.mubr.f32.mxu0 %v105_v61  ;;  %v664_v61 = vld [vmem:[#allocation8 + $0x148] sm:$0xff] }
  0xb2   :  { %1567 = vmatpush1.bf16.msra.mxu1 %v1566_v60 }
  0xb4   :  { %321 = vmatmul.mubr.f32.gmra.mrb[28].mxu0 %v104_v62  ;;  %v666_v62 = vld [vmem:[#allocation8 + $0x158] sm:$0xff] }
  0xb5   :  { %326 = vmatprep.mubr.f32.mxu0 %v107_v63  ;;  %v1568_v63 = vpack.c.bf16 %v666_v62, %v664_v61 }
  0xb7   :  { %1569 = vmatprep.subr.bf16.mxu1 %v1568_v63 }
  0xb8   :  { %327 = vmatmul.mubr.f32.gmra.mrb[30].mxu0 %v106_v0  ;;  %v663_v0 = vld [vmem:[#allocation8 + $0x140] sm:$0xff] }
  0xb9   :  { %v1570_v2 = vpack.c.bf16 %v665_v1, %v663_v0 }
  0xbb   :  { %1571 = vmatpush1.bf16.msra.mxu1 %v1570_v2 }
  0xbc   :  { %1573 = vmatprep.subr.bf16.mxu1 %v1572_v5 }
  0xbf   :  { %1575 = vmatpush1.bf16.msra.mxu1 %v1574_v8 }
  0xc0   :  { %1577 = vmatprep.subr.bf16.mxu1 %v1576_v11 }
  0xc3   :  { %1579 = vmatpush1.bf16.msra.mxu1 %v1578_v14 }
  0xc4   :  { %1581 = vmatprep.subr.bf16.mxu1 %v1580_v17 }
  0xc7   :  { %1583 = vmatpush1.bf16.msra.mxu1 %v1582_v20 }
  0xc8   :  { %1585 = vmatprep.subr.bf16.mxu1 %v1584_v23 }
  0xcb   :  { %1587 = vmatpush1.bf16.msra.mxu1 %v1586_v26 }
  0xcc   :  { %1589 = vmatprep.subr.bf16.mxu1 %v1588_v29 }
  0xcf   :  { %1591 = vmatpush1.bf16.msra.mxu1 %v1590_v32 }
 0x14f   :  { %v1885_v33 = vpop.f32.mrb[0].mxu0 }
 0x150   :  { %v1887_v34 = vpop.f32.mrb[1].mxu0  ;;  %v377_v36 = vmul.f32 %v1885_v33, %v1885_v33 }
 0x151   :  { %v378_v40 = vmul.f32 %v1887_v34, %v1887_v34 }
 0x153   :  { %v1889_v35 = vpop.f32.mrb[2].mxu0 }
 0x154   :  { %v333_v37 = vadd.f32 %v1889_v35, %v1885_v33  ;;  %v379_v38 = vmul.f32 %v1889_v35, %v1889_v35  ;;  %v1897_v39 = vpop.f32.mrb[3].mxu0 }
 0x155   :  { %v354_v41 = vadd.f32 %v1897_v39, %v1887_v34  ;;  %v380_v42 = vmul.f32 %v1897_v39, %v1897_v39 }
 0x156   :  { %v409_v43 = vadd.f32 %v379_v38, %v377_v36 }
 0x157   :  { %v430_v44 = vadd.f32 %v380_v42, %v378_v40  ;;  %v1905_v45 = vpop.f32.mrb[4].mxu0 }
 0x158   :  { %v334_v46 = vadd.f32 %v333_v37, %v1905_v45  ;;  %v381_v47 = vmul.f32 %v1905_v45, %v1905_v45  ;;  %v1910_v48 = vpop.f32.mrb[5].mxu0 }
 0x159   :  { %v355_v49 = vadd.f32 %v354_v41, %v1910_v48  ;;  %v382_v50 = vmul.f32 %v1910_v48, %v1910_v48 }
 0x15a   :  { %v410_v51 = vadd.f32 %v409_v43, %v381_v47 }
 0x15b   :  { %v431_v52 = vadd.f32 %v430_v44, %v382_v50  ;;  %v1915_v53 = vpop.f32.mrb[6].mxu0 }
 0x15c   :  { %v335_v54 = vadd.f32 %v334_v46, %v1915_v53  ;;  %v383_v55 = vmul.f32 %v1915_v53, %v1915_v53  ;;  %v1920_v56 = vpop.f32.mrb[7].mxu0 }
 0x15d   :  { %v356_v57 = vadd.f32 %v355_v49, %v1920_v56  ;;  %v384_v58 = vmul.f32 %v1920_v56, %v1920_v56 }
 0x15e   :  { %v411_v59 = vadd.f32 %v410_v51, %v383_v55 }
 0x15f   :  { %v432_v60 = vadd.f32 %v431_v52, %v384_v58  ;;  %v1925_v61 = vpop.f32.mrb[8].mxu0 }
 0x160   :  { %v336_v62 = vadd.f32 %v335_v54, %v1925_v61  ;;  %v385_v63 = vmul.f32 %v1925_v61, %v1925_v61  ;;  %v1930_v0 = vpop.f32.mrb[9].mxu0 }
 0x161   :  { %v357_v1 = vadd.f32 %v356_v57, %v1930_v0  ;;  %v386_v2 = vmul.f32 %v1930_v0, %v1930_v0 }
 0x162   :  { %v412_v3 = vadd.f32 %v411_v59, %v385_v63 }
 0x163   :  { %v433_v4 = vadd.f32 %v432_v60, %v386_v2  ;;  %v1935_v5 = vpop.f32.mrb[10].mxu0 }
 0x164   :  { %v337_v6 = vadd.f32 %v336_v62, %v1935_v5  ;;  %v387_v7 = vmul.f32 %v1935_v5, %v1935_v5  ;;  %v1940_v8 = vpop.f32.mrb[11].mxu0 }
 0x165   :  { %v358_v9 = vadd.f32 %v357_v1, %v1940_v8  ;;  %v388_v10 = vmul.f32 %v1940_v8, %v1940_v8 }
 0x166   :  { %v413_v11 = vadd.f32 %v412_v3, %v387_v7 }
 0x167   :  { %v434_v12 = vadd.f32 %v433_v4, %v388_v10  ;;  %v1945_v13 = vpop.f32.mrb[12].mxu0 }
 0x168   :  { %v338_v14 = vadd.f32 %v337_v6, %v1945_v13  ;;  %v389_v15 = vmul.f32 %v1945_v13, %v1945_v13  ;;  %v1950_v16 = vpop.f32.mrb[13].mxu0 }
 0x169   :  { %v359_v17 = vadd.f32 %v358_v9, %v1950_v16  ;;  %v390_v18 = vmul.f32 %v1950_v16, %v1950_v16 }
 0x16a   :  { %v414_v19 = vadd.f32 %v413_v11, %v389_v15 }
 0x16b   :  { %v435_v20 = vadd.f32 %v434_v12, %v390_v18  ;;  %v1955_v21 = vpop.f32.mrb[14].mxu0 }
 0x16c   :  { %v339_v22 = vadd.f32 %v338_v14, %v1955_v21  ;;  %v391_v23 = vmul.f32 %v1955_v21, %v1955_v21  ;;  %v1960_v24 = vpop.f32.mrb[15].mxu0 }
 0x16d   :  { %v360_v25 = vadd.f32 %v359_v17, %v1960_v24  ;;  %v392_v26 = vmul.f32 %v1960_v24, %v1960_v24 }
 0x16e   :  { %v415_v27 = vadd.f32 %v414_v19, %v391_v23 }
 0x16f   :  { %v436_v28 = vadd.f32 %v435_v20, %v392_v26  ;;  %v1965_v29 = vpop.f32.mrb[16].mxu0 }
 0x170   :  { %v340_v30 = vadd.f32 %v339_v22, %v1965_v29  ;;  %v393_v31 = vmul.f32 %v1965_v29, %v1965_v29  ;;  %v1970_v32 = vpop.f32.mrb[17].mxu0 }
 0x171   :  { %v361_v36 = vadd.f32 %v360_v25, %v1970_v32  ;;  %v394_v37 = vmul.f32 %v1970_v32, %v1970_v32 }
 0x172   :  { %v416_v38 = vadd.f32 %v415_v27, %v393_v31 }
 0x173   :  { %v437_v40 = vadd.f32 %v436_v28, %v394_v37  ;;  %v1975_v41 = vpop.f32.mrb[18].mxu0 }
 0x174   :  { %v341_v42 = vadd.f32 %v340_v30, %v1975_v41  ;;  %v395_v43 = vmul.f32 %v1975_v41, %v1975_v41  ;;  %v1980_v44 = vpop.f32.mrb[19].mxu0 }
 0x175   :  { %v362_v46 = vadd.f32 %v361_v36, %v1980_v44  ;;  %v396_v47 = vmul.f32 %v1980_v44, %v1980_v44 }
 0x176   :  { %v417_v49 = vadd.f32 %v416_v38, %v395_v43 }
 0x177   :  { %v438_v50 = vadd.f32 %v437_v40, %v396_v47  ;;  %v1985_v51 = vpop.f32.mrb[20].mxu0 }
 0x178   :  { %v342_v52 = vadd.f32 %v341_v42, %v1985_v51  ;;  %v397_v54 = vmul.f32 %v1985_v51, %v1985_v51  ;;  %v1990_v55 = vpop.f32.mrb[21].mxu0 }
 0x179   :  { %v363_v57 = vadd.f32 %v362_v46, %v1990_v55  ;;  %v398_v58 = vmul.f32 %v1990_v55, %v1990_v55 }
 0x17a   :  { %v418_v59 = vadd.f32 %v417_v49, %v397_v54 }
 0x17b   :  { %v439_v60 = vadd.f32 %v438_v50, %v398_v58  ;;  %v1995_v62 = vpop.f32.mrb[22].mxu0 }
 0x17c   :  { %v343_v63 = vadd.f32 %v342_v52, %v1995_v62  ;;  %v399_v1 = vmul.f32 %v1995_v62, %v1995_v62  ;;  %v2000_v2 = vpop.f32.mrb[23].mxu0 }
 0x17d   :  { %v364_v3 = vadd.f32 %v363_v57, %v2000_v2  ;;  %v400_v4 = vmul.f32 %v2000_v2, %v2000_v2 }
 0x17e   :  { %v419_v6 = vadd.f32 %v418_v59, %v399_v1 }
 0x17f   :  { %v440_v7 = vadd.f32 %v439_v60, %v400_v4  ;;  %v2005_v9 = vpop.f32.mrb[24].mxu0 }
 0x180   :  { %v344_v10 = vadd.f32 %v343_v63, %v2005_v9  ;;  %v401_v11 = vmul.f32 %v2005_v9, %v2005_v9  ;;  %v2010_v12 = vpop.f32.mrb[25].mxu0 }
 0x181   :  { %v365_v14 = vadd.f32 %v364_v3, %v2010_v12  ;;  %v402_v15 = vmul.f32 %v2010_v12, %v2010_v12 }
 0x182   :  { %v420_v17 = vadd.f32 %v419_v6, %v401_v11 }
 0x183   :  { %v441_v18 = vadd.f32 %v440_v7, %v402_v15  ;;  %v2015_v19 = vpop.f32.mrb[26].mxu0 }
 0x184   :  { %v345_v20 = vadd.f32 %v344_v10, %v2015_v19  ;;  %v403_v22 = vmul.f32 %v2015_v19, %v2015_v19  ;;  %v2020_v23 = vpop.f32.mrb[27].mxu0 }
 0x185   :  { %v366_v25 = vadd.f32 %v365_v14, %v2020_v23  ;;  %v404_v26 = vmul.f32 %v2020_v23, %v2020_v23 }
 0x186   :  { %v421_v27 = vadd.f32 %v420_v17, %v403_v22 }
 0x187   :  { %v442_v28 = vadd.f32 %v441_v18, %v404_v26  ;;  %v2025_v30 = vpop.f32.mrb[28].mxu0 }
 0x188   :  { %v346_v31 = vadd.f32 %v345_v20, %v2025_v30  ;;  %v405_v36 = vmul.f32 %v2025_v30, %v2025_v30  ;;  %v2030_v37 = vpop.f32.mrb[29].mxu0 }
 0x189   :  { %v367_v38 = vadd.f32 %v366_v25, %v2030_v37  ;;  %v406_v40 = vmul.f32 %v2030_v37, %v2030_v37 }
 0x18a   :  { %v422_v42 = vadd.f32 %v421_v27, %v405_v36 }
 0x18b   :  { %v443_v43 = vadd.f32 %v442_v28, %v406_v40  ;;  %v2035_v46 = vpop.f32.mrb[30].mxu0 }
 0x18c   :  { %v347_v47 = vadd.f32 %v346_v31, %v2035_v46  ;;  %v407_v49 = vmul.f32 %v2035_v46, %v2035_v46  ;;  %v330_v50 = vpop.f32.mrb[31].mxu0 }
 0x18d   :  { %v368_v52 = vadd.f32 %v367_v38, %v330_v50  ;;  %v408_v54 = vmul.f32 %v330_v50, %v330_v50 }
 0x18e   :  { %v348_v57 = vrot.slane %v347_v47, 4  ;;  %v423_v58 = vadd.f32 %v422_v42, %v407_v49 }
 0x18f   :  { %v369_v59 = vrot.slane %v368_v52, 4  ;;  %v444_v60 = vadd.f32 %v443_v43, %v408_v54 }
 0x190   :  { %v349_v63 = vadd.f32 %v348_v57, %v347_v47  ;;  %v424_v1 = vrot.slane %v423_v58, 4 }
 0x191   :  { %v370_v3 = vadd.f32 %v369_v59, %v368_v52  ;;  %v445_v4 = vrot.slane %v444_v60, 4 }
 0x192   :  { %v350_v6 = vrot.slane %v349_v63, 2  ;;  %v425_v7 = vadd.f32 %v424_v1, %v423_v58 }
 0x193   :  { %v371_v10 = vrot.slane %v370_v3, 2  ;;  %v446_v11 = vadd.f32 %v445_v4, %v444_v60 }
 0x194   :  { %v351_v14 = vadd.f32 %v350_v6, %v349_v63  ;;  %v426_v15 = vrot.slane %v425_v7, 2  ;;  %v470_v6 = vlaneseq }
 0x195   :  { %v372_v17 = vadd.f32 %v371_v10, %v370_v3  ;;  %v447_v18 = vrot.slane %v446_v11, 2  ;;  %v1775_v3 = vmov 1966171168  }
 0x196   :  { %v352_v20 = vrot.slane %v351_v14, 1  ;;  %v427_v22 = vadd.f32 %v426_v15, %v425_v7  ;;  %v468_v4 = vunpack.c.l.s4 %v1775_v3  ;;  %v471_v10 = vshrl.u32 %v470_v6, 7 }
 0x197   :  { %v373_v25 = vrot.slane %v372_v17, 1  ;;  %v448_v26 = vadd.f32 %v447_v18, %v446_v11 }
 0x198   :  { %v353_v27 = vadd.f32 %v352_v20, %v351_v14  ;;  %v428_v28 = vrot.slane %v427_v22, 1  ;;  %v469_v7 = vunpack.c.0.s8 %v468_v4  ;;  %v459_v20 = vld [vmem:[%s2468_s2] sm:$0x3] }
 0x199   :  { %v374_v31 = vadd.f32 %v373_v25, %v372_v17  ;;  %v449_v36 = vrot.slane %v448_v26, 1  ;;  %v2047_v25 = vsub.s32 0, %v471_v10 }
 0x19a   :  { %v375_v38 = vmul.f32 0.0078125, %v353_v27  ;;  %v429_v40 = vadd.f32 %v428_v28, %v427_v22  ;;  %v2040_v14 = vsub.s32 %v469_v7, %v471_v10 }
 0x19b   :  { %v376_v42 = vmul.f32 0.0078125, %v374_v31  ;;  %v450_v43 = vadd.f32 %v449_v36, %v448_v26  ;;  %v2049_v26 = vsub.s32 1, %v471_v10 }
 0x19c   :  { %v451_v47 = vmul.f32 0.0078125, %v429_v40  ;;  %v453_v49 = vmul.f32 %v375_v38, %v375_v38 }
 0x19d   :  { %v452_v52 = vmul.f32 0.0078125, %v450_v43  ;;  %v454_v54 = vmul.f32 %v376_v42, %v376_v42 }
 0x19e   :  { %v455_v57 = vsub.f32 %v451_v47, %v453_v49 }
 0x19f   :  { %v456_v58 = vsub.f32 %v452_v52, %v454_v54 }
 0x1a0   :  { %v457_v59 = vmax.f32 %v455_v57, 0.0 }
 0x1a1   :  { %v458_v60 = vmax.f32 %v456_v58, 0.0 }
 0x1a2   :  { %v460_v63 = vadd.f32 1e-05, %v457_v59 }
 0x1a3   :  { %v461_v1 = vadd.f32 1e-05, %v458_v60 }
 0x1a4   :  { %1604 = vrsqrt.f32 %v460_v63 }
 0x1a5   :  { %1606 = vrsqrt.f32 %v461_v1 }
 0x1ae   :  { %v1605_v11 = vpop.eup %1604 }
 0x1af   :  { %v1607_v15 = vpop.eup %1606 }
 0x1b0   :  { %v466_v17 = vcombine.low %v1605_v11, %v1607_v15 }
 0x1b2   :  { %v473_v18 = vrot.slane %v466_v17, %v2040_v14 }
 0x1b4   :  { %v480_v22 = vrot.slane %v473_v18, %v2040_v14 }
 0x1b6   :  { %v482_v27 = vmul.f32 %v480_v22, %v459_v20 }
 0x1b8   :  { %v488_v28 = vrot.slane %v482_v27, %v2047_v25  ;;  %v492_v31 = vrot.slane %v482_v27, %v2049_v26 }
 0x1ba   :  { %v495_v36 = vmul.f32 %v488_v28, %v375_v38  ;;  %v496_v40 = vmul.f32 %v492_v31, %v376_v42  ;;  %v547_v43 = vmul.f32 %v492_v31, %v330_v50  ;;  %v517_v47 = vmul.f32 %v492_v31, %v1887_v34 }
 0x1bb   :  { %v516_v49 = vmul.f32 %v488_v28, %v1885_v33  ;;  %v519_v52 = vmul.f32 %v492_v31, %v1897_v39  ;;  %v518_v54 = vmul.f32 %v488_v28, %v1889_v35  ;;  %v521_v57 = vmul.f32 %v492_v31, %v1910_v48 }
 0x1bc   :  { %v499_v58 = vcombine.low %v495_v36, %v496_v40  ;;  %v520_v59 = vmul.f32 %v488_v28, %v1905_v45  ;;  %v523_v60 = vmul.f32 %v492_v31, %v1920_v56  ;;  %v522_v63 = vmul.f32 %v488_v28, %v1915_v53  ;;  %v483_v53 = vld [vmem:[%s2469_s3] sm:$0x3] }
 0x1bd   :  { %v525_v38 = vmul.f32 %v492_v31, %v1930_v0  ;;  %v524_v50 = vmul.f32 %v488_v28, %v1925_v61  ;;  %v527_v34 = vmul.f32 %v492_v31, %v1940_v8  ;;  %v526_v33 = vmul.f32 %v488_v28, %v1935_v5 }
 0x1be   :  { %v506_v39 = vrot.slane %v499_v58, %v2040_v14  ;;  %v529_v35 = vmul.f32 %v492_v31, %v1950_v16  ;;  %v528_v48 = vmul.f32 %v488_v28, %v1945_v13  ;;  %v531_v45 = vmul.f32 %v492_v31, %v1960_v24 }
 0x1bf   :  { %v530_v56 = vmul.f32 %v488_v28, %v1955_v21  ;;  %v533_v61 = vmul.f32 %v492_v31, %v1970_v32  ;;  %v532_v0 = vmul.f32 %v488_v28, %v1965_v29  ;;  %v535_v5 = vmul.f32 %v492_v31, %v1980_v44 }
 0x1c0   :  { %v513_v8 = vrot.slane %v506_v39, %v2040_v14  ;;  %v534_v16 = vmul.f32 %v488_v28, %v1975_v41  ;;  %v537_v13 = vmul.f32 %v492_v31, %v1990_v55  ;;  %v536_v24 = vmul.f32 %v488_v28, %v1985_v51 }
 0x1c1   :  { %v539_v42 = vmul.f32 %v492_v31, %v2000_v2  ;;  %v538_v1 = vmul.f32 %v488_v28, %v1995_v62  ;;  %v541_v21 = vmul.f32 %v492_v31, %v2010_v12  ;;  %v540_v32 = vmul.f32 %v488_v28, %v2005_v9 }
 0x1c2   :  { %v515_v3 = vsub.f32 %v483_v53, %v513_v8  ;;  %v543_v29 = vmul.f32 %v492_v31, %v2020_v23  ;;  %v542_v44 = vmul.f32 %v488_v28, %v2015_v19  ;;  %v545_v4 = vmul.f32 %v492_v31, %v2030_v37 }
 0x1c3   :  { %v544_v41 = vmul.f32 %v488_v28, %v2025_v30  ;;  %v546_v55 = vmul.f32 %v488_v28, %v2035_v46 }
 0x1c4   :  { %v552_v51 = vrot.slane %v515_v3, %v2047_v25  ;;  %v556_v2 = vrot.slane %v515_v3, %v2049_v26 }
 0x1c6   :  { %v2091_v62 = vadd.f32 %v556_v2, %v547_v43  ;;  %v560_v12 = vadd.f32 %v556_v2, %v517_v47  ;;  %v559_v6 = vadd.f32 %v552_v51, %v516_v49  ;;  %v562_v9 = vadd.f32 %v556_v2, %v519_v52 }
 0x1c7   :  { %v561_v7 = vadd.f32 %v552_v51, %v518_v54  ;;  %v564_v10 = vadd.f32 %v556_v2, %v521_v57  ;;  %v563_v23 = vadd.f32 %v552_v51, %v520_v59  ;;  %v566_v11 = vadd.f32 %v556_v2, %v523_v60 }
 0x1c8   :  { %v592_v19 = vmax.f32 %v560_v12, 0.0  ;;  %v591_v15 = vmax.f32 %v559_v6, 0.0  ;;  %v565_v37 = vadd.f32 %v552_v51, %v522_v63  ;;  %v594_v30 = vmax.f32 %v562_v9, 0.0 }
 0x1c9   :  { %v568_v17 = vadd.f32 %v556_v2, %v525_v38  ;;  %v567_v46 = vadd.f32 %v552_v51, %v524_v50  ;;  %v570_v18 = vadd.f32 %v556_v2, %v527_v34  ;;  %v569_v20 = vadd.f32 %v552_v51, %v526_v33 }
 0x1ca   :  { %751 = vmatprep.mubr.f32.mxu1 %v592_v19  ;;  %v572_v22 = vadd.f32 %v556_v2, %v529_v35  ;;  %v571_v27 = vadd.f32 %v552_v51, %v528_v48  ;;  %v574_v28 = vadd.f32 %v556_v2, %v531_v45  ;;  %v573_v31 = vadd.f32 %v552_v51, %v530_v56 }
 0x1cb   :  { %752 = vmatmul.mubr.f32.vlgmr.msra.gmra.mrb[0].mxu1 %v591_v15  ;;  %v593_v36 = vmax.f32 %v561_v7, 0.0  ;;  %v596_v40 = vmax.f32 %v564_v10, 0.0  ;;  %v576_v43 = vadd.f32 %v556_v2, %v533_v61  ;;  %v575_v47 = vadd.f32 %v552_v51, %v532_v0 }
 0x1cc   :  { %757 = vmatprep.mubr.f32.mxu1 %v594_v30  ;;  %v578_v49 = vadd.f32 %v556_v2, %v535_v5  ;;  %v577_v52 = vadd.f32 %v552_v51, %v534_v16  ;;  %v580_v54 = vadd.f32 %v556_v2, %v537_v13  ;;  %v579_v57 = vadd.f32 %v552_v51, %v536_v24 }
 0x1cd   :  { %v582_v58 = vadd.f32 %v556_v2, %v539_v42  ;;  %v581_v59 = vadd.f32 %v552_v51, %v538_v1  ;;  %v595_v60 = vmax.f32 %v563_v23, 0.0  ;;  %v598_v63 = vmax.f32 %v566_v11, 0.0 }
 0x1ce   :  { %v584_v38 = vadd.f32 %v556_v2, %v541_v21  ;;  %v583_v50 = vadd.f32 %v552_v51, %v540_v32  ;;  %v586_v34 = vadd.f32 %v556_v2, %v543_v29  ;;  %v585_v33 = vadd.f32 %v552_v51, %v542_v44 }
 0x1cf   :  { %758 = vmatmul.mubr.f32.gmra.mrb[2].mxu1 %v593_v36  ;;  %v588_v39 = vadd.f32 %v556_v2, %v545_v4  ;;  %v587_v35 = vadd.f32 %v552_v51, %v544_v41  ;;  %v589_v48 = vadd.f32 %v552_v51, %v546_v55  ;;  %v597_v45 = vmax.f32 %v565_v37, 0.0 }
 0x1d0   :  { %763 = vmatprep.mubr.f32.mxu1 %v596_v40  ;;  %v600_v53 = vmax.f32 %v568_v17, 0.0  ;;  %v599_v56 = vmax.f32 %v567_v46, 0.0  ;;  %v602_v61 = vmax.f32 %v570_v18, 0.0  ;;  %v601_v0 = vmax.f32 %v569_v20, 0.0 }
 0x1d1   :  { %v604_v5 = vmax.f32 %v572_v22, 0.0  ;;  %v603_v8 = vmax.f32 %v571_v27, 0.0  ;;  %v606_v16 = vmax.f32 %v574_v28, 0.0  ;;  %v605_v13 = vmax.f32 %v573_v31, 0.0 }
 0x1d2   :  { %v608_v24 = vmax.f32 %v576_v43, 0.0  ;;  %v607_v42 = vmax.f32 %v575_v47, 0.0  ;;  %v610_v1 = vmax.f32 %v578_v49, 0.0  ;;  %v609_v21 = vmax.f32 %v577_v52, 0.0 }
 0x1d3   :  { %764 = vmatmul.mubr.f32.gmra.mrb[4].mxu1 %v595_v60  ;;  %v612_v32 = vmax.f32 %v580_v54, 0.0  ;;  %v611_v3 = vmax.f32 %v579_v57, 0.0  ;;  %v614_v29 = vmax.f32 %v582_v58, 0.0  ;;  %v613_v44 = vmax.f32 %v581_v59, 0.0 }
 0x1d4   :  { %769 = vmatprep.mubr.f32.mxu1 %v598_v63  ;;  %v616_v4 = vmax.f32 %v584_v38, 0.0  ;;  %v615_v41 = vmax.f32 %v583_v50, 0.0  ;;  %v618_v55 = vmax.f32 %v586_v34, 0.0  ;;  %v617_v51 = vmax.f32 %v585_v33, 0.0 }
 0x1d5   :  { %v620_v2 = vmax.f32 %v588_v39, 0.0  ;;  %v619_v12 = vmax.f32 %v587_v35, 0.0  ;;  %v622_v6 = vmax.f32 %v2091_v62, 0.0  ;;  %v621_v9 = vmax.f32 %v589_v48, 0.0 }
 0x1d7   :  { %770 = vmatmul.mubr.f32.gmra.mrb[6].mxu1 %v597_v45 }
 0x1d8   :  { %775 = vmatprep.mubr.f32.mxu1 %v600_v53 }
 0x1db   :  { %776 = vmatmul.mubr.f32.gmra.mrb[8].mxu1 %v599_v56 }
 0x1dc   :  { %781 = vmatprep.mubr.f32.mxu1 %v602_v61 }
 0x1df   :  { %782 = vmatmul.mubr.f32.gmra.mrb[10].mxu1 %v601_v0 }
 0x1e0   :  { %787 = vmatprep.mubr.f32.mxu1 %v604_v5 }
 0x1e3   :  { %788 = vmatmul.mubr.f32.gmra.mrb[12].mxu1 %v603_v8 }
 0x1e4   :  { %793 = vmatprep.mubr.f32.mxu1 %v606_v16 }
 0x1e7   :  { %794 = vmatmul.mubr.f32.gmra.mrb[14].mxu1 %v605_v13 }
 0x1e8   :  { %799 = vmatprep.mubr.f32.mxu1 %v608_v24 }
 0x1eb   :  { %800 = vmatmul.mubr.f32.gmra.mrb[16].mxu1 %v607_v42 }
 0x1ec   :  { %805 = vmatprep.mubr.f32.mxu1 %v610_v1 }
 0x1ef   :  { %806 = vmatmul.mubr.f32.gmra.mrb[18].mxu1 %v609_v21 }
 0x1f0   :  { %811 = vmatprep.mubr.f32.mxu1 %v612_v32 }
 0x1f3   :  { %812 = vmatmul.mubr.f32.gmra.mrb[20].mxu1 %v611_v3 }
 0x1f4   :  { %817 = vmatprep.mubr.f32.mxu1 %v614_v29 }
 0x1f7   :  { %818 = vmatmul.mubr.f32.gmra.mrb[22].mxu1 %v613_v44 }
 0x1f8   :  { %823 = vmatprep.mubr.f32.mxu1 %v616_v4 }
 0x1fb   :  { %824 = vmatmul.mubr.f32.gmra.mrb[24].mxu1 %v615_v41 }
 0x1fc   :  { %829 = vmatprep.mubr.f32.mxu1 %v618_v55 }
 0x1ff   :  { %830 = vmatmul.mubr.f32.gmra.mrb[26].mxu1 %v617_v51 }
 0x200   :  { %835 = vmatprep.mubr.f32.mxu1 %v620_v2 }
 0x203   :  { %836 = vmatmul.mubr.f32.gmra.mrb[28].mxu1 %v619_v12 }
 0x204   :  { %841 = vmatprep.mubr.f32.mxu1 %v622_v6 }
 0x207   :  { %842 = vmatmul.mubr.f32.gmra.mrb[30].mxu1 %v621_v9 }
 0x29e   :  { %v2094_v7 = vpop.f32.mrb[0].mxu1 }
 0x29f   :  { %v2096_v10 = vpop.f32.mrb[1].mxu1  ;;  %v892_v11 = vmul.f32 %v2094_v7, %v2094_v7 }
 0x2a0   :  { %v893_v37 = vmul.f32 %v2096_v10, %v2096_v10 }
 0x2a2   :  { %v2098_v23 = vpop.f32.mrb[2].mxu1 }
 0x2a3   :  { %v848_v19 = vadd.f32 %v2098_v23, %v2094_v7  ;;  %v894_v15 = vmul.f32 %v2098_v23, %v2098_v23  ;;  %v2106_v62 = vpop.f32.mrb[3].mxu1 }
 0x2a4   :  { %v869_v30 = vadd.f32 %v2106_v62, %v2096_v10  ;;  %v895_v17 = vmul.f32 %v2106_v62, %v2106_v62 }
 0x2a5   :  { %v924_v46 = vadd.f32 %v894_v15, %v892_v11 }
 0x2a6   :  { %v945_v18 = vadd.f32 %v895_v17, %v893_v37  ;;  %v2114_v20 = vpop.f32.mrb[4].mxu1 }
 0x2a7   :  { %v849_v22 = vadd.f32 %v848_v19, %v2114_v20  ;;  %v896_v27 = vmul.f32 %v2114_v20, %v2114_v20  ;;  %v2119_v28 = vpop.f32.mrb[5].mxu1 }
 0x2a8   :  { %v870_v31 = vadd.f32 %v869_v30, %v2119_v28  ;;  %v897_v36 = vmul.f32 %v2119_v28, %v2119_v28 }
 0x2a9   :  { %v925_v40 = vadd.f32 %v924_v46, %v896_v27 }
 0x2aa   :  { %v946_v43 = vadd.f32 %v945_v18, %v897_v36  ;;  %v2124_v47 = vpop.f32.mrb[6].mxu1 }
 0x2ab   :  { %v850_v49 = vadd.f32 %v849_v22, %v2124_v47  ;;  %v898_v52 = vmul.f32 %v2124_v47, %v2124_v47  ;;  %v2129_v54 = vpop.f32.mrb[7].mxu1 }
 0x2ac   :  { %v871_v57 = vadd.f32 %v870_v31, %v2129_v54  ;;  %v899_v58 = vmul.f32 %v2129_v54, %v2129_v54 }
 0x2ad   :  { %v926_v59 = vadd.f32 %v925_v40, %v898_v52 }
 0x2ae   :  { %v947_v60 = vadd.f32 %v946_v43, %v899_v58  ;;  %v2134_v63 = vpop.f32.mrb[8].mxu1 }
 0x2af   :  { %v851_v38 = vadd.f32 %v850_v49, %v2134_v63  ;;  %v900_v50 = vmul.f32 %v2134_v63, %v2134_v63  ;;  %v2139_v34 = vpop.f32.mrb[9].mxu1 }
 0x2b0   :  { %v872_v33 = vadd.f32 %v871_v57, %v2139_v34  ;;  %v901_v39 = vmul.f32 %v2139_v34, %v2139_v34 }
 0x2b1   :  { %v927_v35 = vadd.f32 %v926_v59, %v900_v50 }
 0x2b2   :  { %v948_v48 = vadd.f32 %v947_v60, %v901_v39  ;;  %v2144_v45 = vpop.f32.mrb[10].mxu1 }
 0x2b3   :  { %v852_v53 = vadd.f32 %v851_v38, %v2144_v45  ;;  %v902_v56 = vmul.f32 %v2144_v45, %v2144_v45  ;;  %v2149_v61 = vpop.f32.mrb[11].mxu1 }
 0x2b4   :  { %v873_v0 = vadd.f32 %v872_v33, %v2149_v61  ;;  %v903_v5 = vmul.f32 %v2149_v61, %v2149_v61 }
 0x2b5   :  { %v928_v8 = vadd.f32 %v927_v35, %v902_v56 }
 0x2b6   :  { %v949_v16 = vadd.f32 %v948_v48, %v903_v5  ;;  %v2154_v13 = vpop.f32.mrb[12].mxu1 }
 0x2b7   :  { %v853_v24 = vadd.f32 %v852_v53, %v2154_v13  ;;  %v904_v42 = vmul.f32 %v2154_v13, %v2154_v13  ;;  %v2159_v1 = vpop.f32.mrb[13].mxu1 }
 0x2b8   :  { %v874_v21 = vadd.f32 %v873_v0, %v2159_v1  ;;  %v905_v32 = vmul.f32 %v2159_v1, %v2159_v1 }
 0x2b9   :  { %v929_v3 = vadd.f32 %v928_v8, %v904_v42 }
 0x2ba   :  { %v950_v29 = vadd.f32 %v949_v16, %v905_v32  ;;  %v2164_v44 = vpop.f32.mrb[14].mxu1 }
 0x2bb   :  { %v854_v4 = vadd.f32 %v853_v24, %v2164_v44  ;;  %v906_v41 = vmul.f32 %v2164_v44, %v2164_v44  ;;  %v2169_v55 = vpop.f32.mrb[15].mxu1 }
 0x2bc   :  { %v875_v51 = vadd.f32 %v874_v21, %v2169_v55  ;;  %v907_v2 = vmul.f32 %v2169_v55, %v2169_v55 }
 0x2bd   :  { %v930_v12 = vadd.f32 %v929_v3, %v906_v41 }
 0x2be   :  { %v951_v6 = vadd.f32 %v950_v29, %v907_v2  ;;  %v2174_v9 = vpop.f32.mrb[16].mxu1 }
 0x2bf   :  { %v855_v11 = vadd.f32 %v854_v4, %v2174_v9  ;;  %v908_v19 = vmul.f32 %v2174_v9, %v2174_v9  ;;  %v2179_v15 = vpop.f32.mrb[17].mxu1 }
 0x2c0   :  { %v876_v37 = vadd.f32 %v875_v51, %v2179_v15  ;;  %v909_v30 = vmul.f32 %v2179_v15, %v2179_v15 }
 0x2c1   :  { %v931_v17 = vadd.f32 %v930_v12, %v908_v19 }
 0x2c2   :  { %v952_v46 = vadd.f32 %v951_v6, %v909_v30  ;;  %v2184_v18 = vpop.f32.mrb[18].mxu1 }
 0x2c3   :  { %v856_v22 = vadd.f32 %v855_v11, %v2184_v18  ;;  %v910_v27 = vmul.f32 %v2184_v18, %v2184_v18  ;;  %v2189_v31 = vpop.f32.mrb[19].mxu1 }
 0x2c4   :  { %v877_v36 = vadd.f32 %v876_v37, %v2189_v31  ;;  %v911_v40 = vmul.f32 %v2189_v31, %v2189_v31 }
 0x2c5   :  { %v932_v43 = vadd.f32 %v931_v17, %v910_v27 }
 0x2c6   :  { %v953_v49 = vadd.f32 %v952_v46, %v911_v40  ;;  %v2194_v52 = vpop.f32.mrb[20].mxu1 }
 0x2c7   :  { %v857_v57 = vadd.f32 %v856_v22, %v2194_v52  ;;  %v912_v58 = vmul.f32 %v2194_v52, %v2194_v52  ;;  %v2199_v59 = vpop.f32.mrb[21].mxu1 }
 0x2c8   :  { %v878_v60 = vadd.f32 %v877_v36, %v2199_v59  ;;  %v913_v38 = vmul.f32 %v2199_v59, %v2199_v59 }
 0x2c9   :  { %v933_v50 = vadd.f32 %v932_v43, %v912_v58 }
 0x2ca   :  { %v954_v33 = vadd.f32 %v953_v49, %v913_v38  ;;  %v2204_v39 = vpop.f32.mrb[22].mxu1 }
 0x2cb   :  { %v858_v35 = vadd.f32 %v857_v57, %v2204_v39  ;;  %v914_v48 = vmul.f32 %v2204_v39, %v2204_v39  ;;  %v2209_v53 = vpop.f32.mrb[23].mxu1 }
 0x2cc   :  { %v879_v56 = vadd.f32 %v878_v60, %v2209_v53  ;;  %v915_v0 = vmul.f32 %v2209_v53, %v2209_v53 }
 0x2cd   :  { %v934_v5 = vadd.f32 %v933_v50, %v914_v48 }
 0x2ce   :  { %v955_v8 = vadd.f32 %v954_v33, %v915_v0  ;;  %v2214_v16 = vpop.f32.mrb[24].mxu1 }
 0x2cf   :  { %v859_v24 = vadd.f32 %v858_v35, %v2214_v16  ;;  %v916_v42 = vmul.f32 %v2214_v16, %v2214_v16  ;;  %v2219_v21 = vpop.f32.mrb[25].mxu1 }
 0x2d0   :  { %v880_v32 = vadd.f32 %v879_v56, %v2219_v21  ;;  %v917_v3 = vmul.f32 %v2219_v21, %v2219_v21 }
 0x2d1   :  { %v935_v29 = vadd.f32 %v934_v5, %v916_v42 }
 0x2d2   :  { %v956_v4 = vadd.f32 %v955_v8, %v917_v3  ;;  %v2224_v41 = vpop.f32.mrb[26].mxu1 }
 0x2d3   :  { %v860_v51 = vadd.f32 %v859_v24, %v2224_v41  ;;  %v918_v2 = vmul.f32 %v2224_v41, %v2224_v41  ;;  %v2229_v12 = vpop.f32.mrb[27].mxu1 }
 0x2d4   :  { %v881_v6 = vadd.f32 %v880_v32, %v2229_v12  ;;  %v919_v11 = vmul.f32 %v2229_v12, %v2229_v12 }
 0x2d5   :  { %v936_v19 = vadd.f32 %v935_v29, %v918_v2 }
 0x2d6   :  { %v957_v37 = vadd.f32 %v956_v4, %v919_v11  ;;  %v2234_v30 = vpop.f32.mrb[28].mxu1 }
 0x2d7   :  { %v861_v17 = vadd.f32 %v860_v51, %v2234_v30  ;;  %v920_v46 = vmul.f32 %v2234_v30, %v2234_v30  ;;  %v2239_v22 = vpop.f32.mrb[29].mxu1 }
 0x2d8   :  { %v882_v27 = vadd.f32 %v881_v6, %v2239_v22  ;;  %v921_v36 = vmul.f32 %v2239_v22, %v2239_v22 }
 0x2d9   :  { %v937_v40 = vadd.f32 %v936_v19, %v920_v46 }
 0x2da   :  { %v958_v43 = vadd.f32 %v957_v37, %v921_v36  ;;  %v2244_v49 = vpop.f32.mrb[30].mxu1 }
 0x2db   :  { %v862_v57 = vadd.f32 %v861_v17, %v2244_v49  ;;  %v922_v58 = vmul.f32 %v2244_v49, %v2244_v49  ;;  %v845_v60 = vpop.f32.mrb[31].mxu1 }
 0x2dc   :  { %v883_v38 = vadd.f32 %v882_v27, %v845_v60  ;;  %v923_v50 = vmul.f32 %v845_v60, %v845_v60 }
 0x2dd   :  { %v863_v33 = vrot.slane %v862_v57, 4  ;;  %v938_v35 = vadd.f32 %v937_v40, %v922_v58 }
 0x2de   :  { %v884_v48 = vrot.slane %v883_v38, 4  ;;  %v959_v56 = vadd.f32 %v958_v43, %v923_v50 }
 0x2df   :  { %v864_v0 = vadd.f32 %v863_v33, %v862_v57  ;;  %v939_v5 = vrot.slane %v938_v35, 4 }
 0x2e0   :  { %v885_v8 = vadd.f32 %v884_v48, %v883_v38  ;;  %v960_v24 = vrot.slane %v959_v56, 4 }
 0x2e1   :  { %v865_v42 = vrot.slane %v864_v0, 2  ;;  %v940_v32 = vadd.f32 %v939_v5, %v938_v35 }
 0x2e2   :  { %v886_v3 = vrot.slane %v885_v8, 2  ;;  %v961_v29 = vadd.f32 %v960_v24, %v959_v56 }
 0x2e3   :  { %v866_v4 = vadd.f32 %v865_v42, %v864_v0  ;;  %v941_v51 = vrot.slane %v940_v32, 2 }
 0x2e4   :  { %v887_v2 = vadd.f32 %v886_v3, %v885_v8  ;;  %v962_v6 = vrot.slane %v961_v29, 2 }
 0x2e5   :  { %v867_v11 = vrot.slane %v866_v4, 1  ;;  %v942_v19 = vadd.f32 %v941_v51, %v940_v32  ;;  %v974_v51 = vld [vmem:[%s2471_s5] sm:$0x3] }
 0x2e6   :  { %v888_v37 = vrot.slane %v887_v2, 1  ;;  %v963_v17 = vadd.f32 %v962_v6, %v961_v29 }
 0x2e7   :  { %v868_v46 = vadd.f32 %v867_v11, %v866_v4  ;;  %v943_v27 = vrot.slane %v942_v19, 1 }
 0x2e8   :  { %v889_v36 = vadd.f32 %v888_v37, %v887_v2  ;;  %v964_v40 = vrot.slane %v963_v17, 1 }
 0x2e9   :  { %v890_v43 = vmul.f32 0.0078125, %v868_v46  ;;  %v944_v57 = vadd.f32 %v943_v27, %v942_v19 }
 0x2ea   :  { %v891_v58 = vmul.f32 0.0078125, %v889_v36  ;;  %v965_v38 = vadd.f32 %v964_v40, %v963_v17 }
 0x2eb   :  { %v966_v50 = vmul.f32 0.0078125, %v944_v57  ;;  %v968_v33 = vmul.f32 %v890_v43, %v890_v43 }
 0x2ec   :  { %v967_v35 = vmul.f32 0.0078125, %v965_v38  ;;  %v969_v48 = vmul.f32 %v891_v58, %v891_v58 }
 0x2ed   :  { %v970_v56 = vsub.f32 %v966_v50, %v968_v33 }
 0x2ee   :  { %v971_v0 = vsub.f32 %v967_v35, %v969_v48 }
 0x2ef   :  { %v972_v5 = vmax.f32 %v970_v56, 0.0 }
 0x2f0   :  { %v973_v8 = vmax.f32 %v971_v0, 0.0 }
 0x2f1   :  { %v975_v24 = vadd.f32 1e-05, %v972_v5 }
 0x2f2   :  { %v976_v42 = vadd.f32 1e-05, %v973_v8 }
 0x2f3   :  { %1608 = vrsqrt.f32 %v975_v24 }
 0x2f4   :  { %1610 = vrsqrt.f32 %v976_v42 }
 0x2fd   :  { %v1609_v32 = vpop.eup %1608 }
 0x2fe   :  { %v1611_v3 = vpop.eup %1610 }
 0x2ff   :  { %v981_v29 = vcombine.low %v1609_v32, %v1611_v3 }
 0x301   :  { %v988_v4 = vrot.slane %v981_v29, %v2040_v14 }
 0x303   :  { %v995_v2 = vrot.slane %v988_v4, %v2040_v14 }
 0x305   :  { %v997_v6 = vmul.f32 %v995_v2, %v974_v51 }
 0x307   :  { %v1003_v11 = vrot.slane %v997_v6, %v2047_v25  ;;  %v1007_v19 = vrot.slane %v997_v6, %v2049_v26 }
 0x309   :  { %v1010_v37 = vmul.f32 %v1003_v11, %v890_v43  ;;  %v1011_v17 = vmul.f32 %v1007_v19, %v891_v58  ;;  %v1062_v46 = vmul.f32 %v1007_v19, %v845_v60  ;;  %v1035_v27 = vmul.f32 %v1003_v11, %v2114_v20 }
 0x30a   :  { %v1036_v36 = vmul.f32 %v1007_v19, %v2119_v28  ;;  %v1031_v40 = vmul.f32 %v1003_v11, %v2094_v7  ;;  %v1032_v57 = vmul.f32 %v1007_v19, %v2096_v10  ;;  %v1037_v38 = vmul.f32 %v1003_v11, %v2124_v47 }
 0x30b   :  { %v1014_v50 = vcombine.low %v1010_v37, %v1011_v17  ;;  %v1038_v33 = vmul.f32 %v1007_v19, %v2129_v54  ;;  %v1033_v35 = vmul.f32 %v1003_v11, %v2098_v23  ;;  %v1034_v48 = vmul.f32 %v1007_v19, %v2106_v62  ;;  %v998_v62 = vld [vmem:[%s2472_s6] sm:$0x3] }
 0x30c   :  { %v1041_v43 = vmul.f32 %v1003_v11, %v2144_v45  ;;  %v1042_v60 = vmul.f32 %v1007_v19, %v2149_v61  ;;  %v1039_v20 = vmul.f32 %v1003_v11, %v2134_v63  ;;  %v2268_v28 = vmul.f32 %v1007_v19, %v2139_v34 }
 0x30d   :  { %v1021_v7 = vrot.slane %v1014_v50, %v2040_v14  ;;  %v2272_v10 = vmul.f32 %v1003_v11, %v2164_v44  ;;  %v2275_v47 = vmul.f32 %v1007_v19, %v2169_v55  ;;  %v2278_v23 = vmul.f32 %v1003_v11, %v2154_v13 }
 0x30e   :  { %v2284_v54 = vmul.f32 %v1007_v19, %v2159_v1  ;;  %v2287_v63 = vmul.f32 %v1003_v11, %v2184_v18  ;;  %v2290_v34 = vmul.f32 %v1007_v19, %v2189_v31  ;;  %v2293_v45 = vmul.f32 %v1003_v11, %v2174_v9 }
 0x30f   :  { %v1028_v61 = vrot.slane %v1021_v7, %v2040_v14  ;;  %v2297_v13 = vmul.f32 %v1007_v19, %v2179_v15  ;;  %v2300_v44 = vmul.f32 %v1003_v11, %v2204_v39  ;;  %v2303_v1 = vmul.f32 %v1007_v19, %v2209_v53  ;;  %v1138_v15 = vld [vmem:[%s2473_s7] sm:$0x3]  ;;  %s1777_s7 = smov [#allocation9]  }
 0x310   :  { %v2306_v55 = vmul.f32 %v1003_v11, %v2194_v52  ;;  %v2309_v18 = vmul.f32 %v1007_v19, %v2199_v59  ;;  %v2312_v9 = vmul.f32 %v1003_v11, %v2224_v41  ;;  %v2315_v14 = vmul.f32 %v1007_v19, %v2229_v12  ;;  %s1450_s29 = sshll.u32 %s1777_s7, 4  ;;  %s1451_s29 = int_to_ptr.vmem [resolvable:$true] %s1450_s29 }
 0x311   :  { %v1030_v31 = vsub.f32 %v998_v62, %v1028_v61  ;;  %v2321_v39 = vmul.f32 %v1003_v11, %v2214_v16  ;;  %v2324_v52 = vmul.f32 %v1007_v19, %v2219_v21  ;;  %v2327_v59 = vmul.f32 %v1003_v11, %v2244_v49  ;;  %s1742_s30 = scalar_lea.vmem %s1451_s29, 2048  ;;  %p1747_p11 = scmp.lt.s32.totalorder %s1451_s29, %s1451_s29 }
 0x312   :  { %v2330_v53 = vmul.f32 %v1003_v11, %v2234_v30  ;;  %v2333_v41 = vmul.f32 %v1007_v19, %v2239_v22  ;;  %v2342_v16 = vrot.slane %v1138_v15, %v2047_v25  ;;  %v2345_v21 = vrot.slane %v1138_v15, %v2049_v26  ;;  %p1743_p10 = scmp.ne.s32.totalorder %s1451_s29, %s1742_s30  ;;  %p1748_p12 = scmp.lt.s32.totalorder %s1742_s30, %s1742_s30 }
 0x313   :  { %v2336_v12 = vrot.slane %v1030_v31, %v2047_v25  ;;  %v2339_v58 = vrot.slane %v1030_v31, %v2049_v26 }
 0x314   :  { %p1749_p13 = por %p1748_p12, %p1747_p11 }
 0x315   :  { %v2348_v49 = vadd.f32 %v2339_v58, %v1062_v46  ;;  %v1078_v30 = vadd.f32 %v2336_v12, %v1035_v27  ;;  %v1079_v22 = vadd.f32 %v2339_v58, %v1036_v36  ;;  %v1074_v56 = vadd.f32 %v2336_v12, %v1031_v40 }
 0x316   :  { %v1075_v0 = vadd.f32 %v2339_v58, %v1032_v57  ;;  %v1080_v5 = vadd.f32 %v2336_v12, %v1037_v38  ;;  %v1081_v8 = vadd.f32 %v2339_v58, %v1038_v33  ;;  %v1076_v25 = vadd.f32 %v2336_v12, %v1033_v35  ;;  %p1750_p0 = pnand %p1749_p13, %p1743_p10 }
 0x317   :  { %v1137_v26 = vmax.f32 %v2348_v49, 0.0  ;;  %v1110_v24 = vmax.f32 %v1078_v30, 0.0  ;;  %v1111_v42 = vmax.f32 %v1079_v22, 0.0  ;;  %v1106_v32 = vmax.f32 %v1074_v56, 0.0 }
 0x318   :  { %v1107_v3 = vmax.f32 %v1075_v0, 0.0  ;;  %v1112_v29 = vmax.f32 %v1080_v5, 0.0  ;;  %v1113_v4 = vmax.f32 %v1081_v8, 0.0  ;;  %v1077_v51 = vadd.f32 %v2339_v58, %v1034_v48 }
 0x319   :  { %v1154_v2 = vmul.f32 %v2342_v16, %v1110_v24  ;;  %v1155_v6 = vmul.f32 %v2345_v21, %v1111_v42  ;;  %v1150_v11 = vmul.f32 %v2342_v16, %v1106_v32  ;;  %v1108_v19 = vmax.f32 %v1076_v25, 0.0 }
 0x31a   :  { %v1151_v37 = vmul.f32 %v2345_v21, %v1107_v3  ;;  %v1156_v17 = vmul.f32 %v2342_v16, %v1112_v29  ;;  %v1157_v46 = vmul.f32 %v2345_v21, %v1113_v4  ;;  %v1109_v27 = vmax.f32 %v1077_v51, 0.0 }
 0x31b   :  { %v1188_v36 = vadd.f32 %v1155_v6, %v1154_v2  ;;  %v1152_v40 = vmul.f32 %v2342_v16, %v1108_v19  ;;  %v1084_v57 = vadd.f32 %v2336_v12, %v1041_v43  ;;  %v1085_v38 = vadd.f32 %v2339_v58, %v1042_v60 }
 0x31c   :  { %v1182_v50 = vadd.f32 %v1151_v37, %v1150_v11  ;;  %v1191_v33 = vadd.f32 %v1157_v46, %v1156_v17  ;;  %v1153_v35 = vmul.f32 %v2345_v21, %v1109_v27  ;;  %v1082_v48 = vadd.f32 %v2336_v12, %v1039_v20 }
 0x31d   :  { %1189 = vadd.xlane.f32.xlu1 %v1188_v36  ;;  %v1116_v7 = vmax.f32 %v1084_v57, 0.0  ;;  %v1117_v62 = vmax.f32 %v1085_v38, 0.0  ;;  %v1083_v61 = vadd.f32 %v2339_v58, %v2268_v28  ;;  %v1088_v15 = vadd.f32 %v2336_v12, %v2272_v10 }
 0x31e   :  { %1183 = vadd.xlane.f32.xlu0 %v1182_v50  ;;  %v1185_v31 = vadd.f32 %v1153_v35, %v1152_v40  ;;  %v1114_v43 = vmax.f32 %v1082_v48, 0.0  ;;  %v1089_v60 = vadd.f32 %v2339_v58, %v2275_v47  ;;  %v1086_v30 = vadd.f32 %v2336_v12, %v2278_v23 }
 0x31f   :  { %v1160_v20 = vmul.f32 %v2342_v16, %v1116_v7  ;;  %v1161_v22 = vmul.f32 %v2345_v21, %v1117_v62  ;;  %v1115_v56 = vmax.f32 %v1083_v61, 0.0  ;;  %v1120_v0 = vmax.f32 %v1088_v15, 0.0 }
 0x320   :  { %v1158_v28 = vmul.f32 %v2342_v16, %v1114_v43  ;;  %v1121_v5 = vmax.f32 %v1089_v60, 0.0  ;;  %v1087_v10 = vadd.f32 %v2339_v58, %v2284_v54  ;;  %v1118_v8 = vmax.f32 %v1086_v30, 0.0 }
 0x321   :  { %1192 = vadd.xlane.f32.xlu1 %v1191_v33  ;;  %v1197_v25 = vadd.f32 %v1161_v22, %v1160_v20  ;;  %v1159_v47 = vmul.f32 %v2345_v21, %v1115_v56  ;;  %v1164_v24 = vmul.f32 %v2342_v16, %v1120_v0  ;;  %v1092_v23 = vadd.f32 %v2336_v12, %v2287_v63 }
 0x322   :  { %1186 = vadd.xlane.f32.xlu0 %v1185_v31  ;;  %v1165_v42 = vmul.f32 %v2345_v21, %v1121_v5  ;;  %v1119_v32 = vmax.f32 %v1087_v10, 0.0  ;;  %v1162_v3 = vmul.f32 %v2342_v16, %v1118_v8  ;;  %v1093_v29 = vadd.f32 %v2339_v58, %v2290_v34 }
 0x323   :  { %v1194_v54 = vadd.f32 %v1159_v47, %v1158_v28  ;;  %v1124_v4 = vmax.f32 %v1092_v23, 0.0  ;;  %v1090_v51 = vadd.f32 %v2336_v12, %v2293_v45  ;;  %v1091_v2 = vadd.f32 %v2339_v58, %v2297_v13 }
 0x324   :  { %v1203_v6 = vadd.f32 %v1165_v42, %v1164_v24  ;;  %v1163_v63 = vmul.f32 %v2345_v21, %v1119_v32  ;;  %v1125_v11 = vmax.f32 %v1093_v29, 0.0  ;;  %v1096_v19 = vadd.f32 %v2336_v12, %v2300_v44 }
 0x325   :  { %1198 = vadd.xlane.f32.xlu1 %v1197_v25  ;;  %v1168_v37 = vmul.f32 %v2342_v16, %v1124_v4  ;;  %v1122_v17 = vmax.f32 %v1090_v51, 0.0  ;;  %v1123_v34 = vmax.f32 %v1091_v2, 0.0  ;;  %v1097_v46 = vadd.f32 %v2339_v58, %v2303_v1 }
 0x326   :  { %1195 = vadd.xlane.f32.xlu0 %v1194_v54  ;;  %v1200_v45 = vadd.f32 %v1163_v63, %v1162_v3  ;;  %v1169_v27 = vmul.f32 %v2345_v21, %v1125_v11  ;;  %v1128_v13 = vmax.f32 %v1096_v19, 0.0  ;;  %v1094_v36 = vadd.f32 %v2336_v12, %v2306_v55 }
 0x327   :  { %v1166_v40 = vmul.f32 %v2342_v16, %v1122_v17  ;;  %v1167_v44 = vmul.f32 %v2345_v21, %v1123_v34  ;;  %v1129_v57 = vmax.f32 %v1097_v46, 0.0  ;;  %v1095_v38 = vadd.f32 %v2339_v58, %v2309_v18 }
 0x328   :  { %v1209_v50 = vadd.f32 %v1169_v27, %v1168_v37  ;;  %v1172_v33 = vmul.f32 %v2342_v16, %v1128_v13  ;;  %v1126_v1 = vmax.f32 %v1094_v36, 0.0  ;;  %v1100_v35 = vadd.f32 %v2336_v12, %v2312_v9 }
 0x329   :  { %1204 = vadd.xlane.f32.xlu1 %v1203_v6  ;;  %v1206_v48 = vadd.f32 %v1167_v44, %v1166_v40  ;;  %v1173_v7 = vmul.f32 %v2345_v21, %v1129_v57  ;;  %v1127_v55 = vmax.f32 %v1095_v38, 0.0  ;;  %v1101_v62 = vadd.f32 %v2339_v58, %v2315_v14 }
 0x32a   :  { %1201 = vadd.xlane.f32.xlu0 %v1200_v45  ;;  %v1170_v61 = vmul.f32 %v2342_v16, %v1126_v1  ;;  %v1132_v15 = vmax.f32 %v1100_v35, 0.0  ;;  %v1098_v18 = vadd.f32 %v2336_v12, %v2321_v39  ;;  %v1099_v31 = vadd.f32 %v2339_v58, %v2324_v52 }
 0x32b   :  { %v1215_v43 = vadd.f32 %v1173_v7, %v1172_v33  ;;  %v1171_v9 = vmul.f32 %v2345_v21, %v1127_v55  ;;  %v1133_v60 = vmax.f32 %v1101_v62, 0.0  ;;  %v1104_v30 = vadd.f32 %v2336_v12, %v2327_v59 }
 0x32c   :  { %v1176_v20 = vmul.f32 %v2342_v16, %v1132_v15  ;;  %v1130_v14 = vmax.f32 %v1098_v18, 0.0  ;;  %v1131_v22 = vmax.f32 %v1099_v31, 0.0  ;;  %v1181_v56 = vmul.f32 %v2345_v21, %v1137_v26 }
 0x32d   :  { %1210 = vadd.xlane.f32.xlu1 %v1209_v50  ;;  %v1212_v39 = vadd.f32 %v1171_v9, %v1170_v61  ;;  %v1177_v0 = vmul.f32 %v2345_v21, %v1133_v60  ;;  %v1136_v52 = vmax.f32 %v1104_v30, 0.0  ;;  %v1102_v28 = vadd.f32 %v2336_v12, %v2330_v53 }
 0x32e   :  { %1207 = vadd.xlane.f32.xlu0 %v1206_v48  ;;  %v1174_v5 = vmul.f32 %v2342_v16, %v1130_v14  ;;  %v1175_v59 = vmul.f32 %v2345_v21, %v1131_v22  ;;  %v1103_v10 = vadd.f32 %v2339_v58, %v2333_v41  ;;  %v1776_v42 = vmov 0   ;;  %v2436_v41 = vld [vmem:[#allocation2] ss:$0 sm:$0xff] }
 0x32f   :  { %v1221_v8 = vadd.f32 %v1177_v0, %v1176_v20  ;;  %v1180_v49 = vmul.f32 %v2342_v16, %v1136_v52  ;;  %v1134_v26 = vmax.f32 %v1102_v28, 0.0  ;;  %1602 = vset.pattern.permute.xlu0 %v1776_v42  ;;  %1603 = vset.pattern.permute.xlu1 %v1776_v42 }
 0x330   :  { %v1218_v25 = vadd.f32 %v1175_v59, %v1174_v5  ;;  %v1135_v47 = vmax.f32 %v1103_v10, 0.0 }
 0x331   :  { %1216 = vadd.xlane.f32.xlu1 %v1215_v43  ;;  %v1227_v24 = vadd.f32 %v1181_v56, %v1180_v49  ;;  %v1178_v23 = vmul.f32 %v2342_v16, %v1134_v26 }
 0x332   :  { %1213 = vadd.xlane.f32.xlu0 %v1212_v39  ;;  %v1179_v53 = vmul.f32 %v2345_v21, %v1135_v47 }
 0x334   :  { %v1224_v12 = vadd.f32 %v1179_v53, %v1178_v23 }
 0x335   :  { %1222 = vadd.xlane.f32.xlu1 %v1221_v8 }
 0x336   :  { %1219 = vadd.xlane.f32.xlu0 %v1218_v25 }
 0x339   :  { %1228 = vadd.xlane.f32.xlu1 %v1227_v24 }
 0x33a   :  { %1225 = vadd.xlane.f32.xlu0 %v1224_v12 }
 0x3aa   :  { %v1190_v58 = vpop.xlane.xlu1 %1189 }
 0x3ab   :  { %v1239_v32 = vadd.f32 %v2436_v41, %v1190_v58  ;;  %v1184_v3 = vpop.xlane.xlu0 %1183 }
 0x3ac   :  { %v1237_v29 = vadd.f32 %v2436_v41, %v1184_v3 }
 0x3ad   :  { %v1255_v16 = vsub.f32 0.0, %v1239_v32 }
 0x3ae   :  { %v1253_v54 = vsub.f32 0.0, %v1237_v29  ;;  %v1193_v4 = vpop.xlane.xlu1 %1192 }
 0x3af   :  { %v1240_v21 = vadd.f32 %v2436_v41, %v1193_v4  ;;  %v1187_v51 = vpop.xlane.xlu0 %1186  ;;  %v1273_v63 = vmul.f32 1.442695, %v1255_v16 }
 0x3b0   :  { %v1269_v2 = vmul.f32 1.442695, %v1253_v54  ;;  %v1238_v6 = vadd.f32 %v2436_v41, %v1187_v51 }
 0x3b1   :  { %v1256_v11 = vsub.f32 0.0, %v1240_v21 }
 0x3b2   :  { %1612 = vpow2.f32 %v1269_v2  ;;  %v1254_v19 = vsub.f32 0.0, %v1238_v6  ;;  %v1199_v37 = vpop.xlane.xlu1 %1198 }
 0x3b3   :  { %v1196_v17 = vpop.xlane.xlu0 %1195  ;;  %1614 = vpow2.f32 %v1273_v63  ;;  %v1275_v45 = vmul.f32 1.442695, %v1256_v11  ;;  %v1242_v27 = vadd.f32 %v2436_v41, %v1199_v37 }
 0x3b4   :  { %v1271_v34 = vmul.f32 1.442695, %v1254_v19  ;;  %v1241_v46 = vadd.f32 %v2436_v41, %v1196_v17 }
 0x3b5   :  { %v1258_v57 = vsub.f32 0.0, %v1242_v27 }
 0x3b6   :  { %1616 = vpow2.f32 %v1271_v34  ;;  %v1257_v13 = vsub.f32 0.0, %v1241_v46  ;;  %v1205_v36 = vpop.xlane.xlu1 %1204 }
 0x3b7   :  { %v1202_v40 = vpop.xlane.xlu0 %1201  ;;  %1618 = vpow2.f32 %v1275_v45  ;;  %v1279_v55 = vmul.f32 1.442695, %v1258_v57  ;;  %v1244_v62 = vadd.f32 %v2436_v41, %v1205_v36 }
 0x3b8   :  { %v1277_v44 = vmul.f32 1.442695, %v1257_v13  ;;  %v1243_v38 = vadd.f32 %v2436_v41, %v1202_v40 }
 0x3b9   :  { %v1260_v22 = vsub.f32 0.0, %v1244_v62 }
 0x3ba   :  { %v1211_v50 = vpop.xlane.xlu1 %1210  ;;  %1620 = vpow2.f32 %v1277_v44  ;;  %v1259_v61 = vsub.f32 0.0, %v1243_v38 }
 0x3bb   :  { %v1246_v33 = vadd.f32 %v2436_v41, %v1211_v50  ;;  %v1208_v1 = vpop.xlane.xlu0 %1207  ;;  %v1283_v25 = vmul.f32 1.442695, %v1260_v22 }
 0x3bc   :  { %v1613_v35 = vpop.eup %1612  ;;  %v1245_v30 = vadd.f32 %v2436_v41, %v1208_v1  ;;  %v1281_v56 = vmul.f32 1.442695, %v1259_v61 }
 0x3bd   :  { %v1301_v48 = vadd.f32 1.0, %v1613_v35  ;;  %v1262_v7 = vsub.f32 0.0, %v1246_v33  ;;  %v1615_v18 = vpop.eup %1614 }
 0x3be   :  { %v1217_v15 = vpop.xlane.xlu1 %1216  ;;  %v1303_v0 = vadd.f32 1.0, %v1615_v18  ;;  %v1261_v59 = vsub.f32 0.0, %v1245_v30 }
 0x3bf   :  { %1622 = vrcp.f32 %v1301_v48  ;;  %v1287_v31 = vmul.f32 1.442695, %v1262_v7  ;;  %v1248_v43 = vadd.f32 %v2436_v41, %v1217_v15  ;;  %v1214_v9 = vpop.xlane.xlu0 %1213 }
 0x3c0   :  { %v1617_v60 = vpop.eup %1616  ;;  %v1247_v10 = vadd.f32 %v2436_v41, %v1214_v9  ;;  %v1285_v12 = vmul.f32 1.442695, %v1261_v59 }
 0x3c1   :  { %v1302_v20 = vadd.f32 1.0, %v1617_v60  ;;  %1624 = vpow2.f32 %v1287_v31  ;;  %v1264_v14 = vsub.f32 0.0, %v1248_v43  ;;  %v1619_v5 = vpop.eup %1618 }
 0x3c2   :  { %1626 = vpow2.f32 %v1279_v55  ;;  %v1223_v39 = vpop.xlane.xlu1 %1222  ;;  %v1304_v24 = vadd.f32 1.0, %v1619_v5  ;;  %v1263_v42 = vsub.f32 0.0, %v1247_v10 }
 0x3c3   :  { %1628 = vrcp.f32 %v1302_v20  ;;  %v1291_v52 = vmul.f32 1.442695, %v1264_v14  ;;  %v1250_v28 = vadd.f32 %v2436_v41, %v1223_v39  ;;  %v1220_v49 = vpop.xlane.xlu0 %1219 }
 0x3c4   :  { %v1621_v26 = vpop.eup %1620  ;;  %v1249_v3 = vadd.f32 %v2436_v41, %v1220_v49  ;;  %v1289_v6 = vmul.f32 1.442695, %v1263_v42 }
 0x3c5   :  { %1630 = vpow2.f32 %v1291_v52  ;;  %v1266_v8 = vsub.f32 0.0, %v1250_v28  ;;  %v1305_v32 = vadd.f32 1.0, %v1621_v26 }
 0x3c6   :  { %1632 = vpow2.f32 %v1281_v56  ;;  %v1229_v47 = vpop.xlane.xlu1 %1228  ;;  %v1265_v63 = vsub.f32 0.0, %v1249_v3 }
 0x3c7   :  { %1634 = vrcp.f32 %v1303_v0  ;;  %v1295_v23 = vmul.f32 1.442695, %v1266_v8  ;;  %v1252_v53 = vadd.f32 %v2436_v41, %v1229_v47  ;;  %v1226_v4 = vpop.xlane.xlu0 %1225 }
 0x3c8   :  { %v1251_v11 = vadd.f32 %v2436_v41, %v1226_v4  ;;  %v1293_v45 = vmul.f32 1.442695, %v1265_v63 }
 0x3c9   :  { %v1623_v58 = vpop.eup %1622  ;;  %1636 = vpow2.f32 %v1295_v23  ;;  %v1268_v29 = vsub.f32 0.0, %v1252_v53 }
 0x3ca   :  { %1638 = vpow2.f32 %v1283_v25  ;;  %1351 = vperm.xlu0 %1602, %v1623_v58   ;;  %v1267_v27 = vsub.f32 0.0, %v1251_v11 }
 0x3cb   :  { %v1625_v16 = vpop.eup %1624  ;;  %1640 = vrcp.f32 %v1304_v24  ;;  %v1299_v54 = vmul.f32 1.442695, %v1268_v29 }
 0x3cc   :  { %v1627_v21 = vpop.eup %1626  ;;  %v1310_v51 = vadd.f32 1.0, %v1625_v16  ;;  %1642 = vpow2.f32 %v1285_v12  ;;  %v1297_v38 = vmul.f32 1.442695, %v1267_v27 }
 0x3cd   :  { %v1629_v2 = vpop.eup %1628  ;;  %1644 = vrcp.f32 %v1305_v32  ;;  %v1306_v37 = vadd.f32 1.0, %v1627_v21 }
 0x3ce   :  { %1646 = vrcp.f32 %v1310_v51  ;;  %1356 = vperm.xlu1 %1603, %v1629_v2  }
 0x3cf   :  { %v1631_v19 = vpop.eup %1630  ;;  %1648 = vpow2.f32 %v1299_v54 }
 0x3d0   :  { %v1633_v17 = vpop.eup %1632  ;;  %v1312_v34 = vadd.f32 1.0, %v1631_v19  ;;  %1650 = vpow2.f32 %v1289_v6 }
 0x3d1   :  { %v1635_v46 = vpop.eup %1634  ;;  %v1307_v36 = vadd.f32 1.0, %v1633_v17 }
 0x3d2   :  { %1652 = vrcp.f32 %v1312_v34  ;;  %1361 = vperm.xlu1 %1603, %v1635_v46  }
 0x3d3   :  { %v1637_v13 = vpop.eup %1636  ;;  %1654 = vrcp.f32 %v1306_v37 }
 0x3d4   :  { %v1639_v40 = vpop.eup %1638  ;;  %v1314_v44 = vadd.f32 1.0, %v1637_v13  ;;  %1656 = vpow2.f32 %v1293_v45 }
 0x3d5   :  { %v1641_v57 = vpop.eup %1640  ;;  %v1308_v33 = vadd.f32 1.0, %v1639_v40 }
 0x3d6   :  { %v1643_v41 = vpop.eup %1642  ;;  %1658 = vrcp.f32 %v1314_v44  ;;  %1366 = vperm.xlu1 %1603, %v1641_v57  }
 0x3d7   :  { %v1645_v50 = vpop.eup %1644  ;;  %1660 = vrcp.f32 %v1307_v36  ;;  %v1309_v55 = vadd.f32 1.0, %v1643_v41 }
 0x3d8   :  { %v1647_v1 = vpop.eup %1646  ;;  %1662 = vpow2.f32 %v1297_v38 }
 0x3d9   :  { %v1649_v35 = vpop.eup %1648  ;;  %1396 = vperm.xlu0 %1602, %v1647_v1   ;;  %1664 = vrcp.f32 %v1308_v33 }
 0x3da   :  { %v1316_v48 = vadd.f32 1.0, %v1649_v35  ;;  %1371 = vperm.xlu1 %1603, %v1645_v50   ;;  %v1651_v7 = vpop.eup %1650 }
 0x3db   :  { %v1311_v18 = vadd.f32 1.0, %v1651_v7 }
 0x3dc   :  { %v1653_v62 = vpop.eup %1652  ;;  %1666 = vrcp.f32 %v1316_v48 }
 0x3dd   :  { %v1655_v61 = vpop.eup %1654  ;;  %1406 = vperm.xlu0 %1602, %v1653_v62   ;;  %1668 = vrcp.f32 %v1309_v55 }
 0x3de   :  { %1376 = vperm.xlu1 %1603, %v1655_v61   ;;  %v1657_v15 = vpop.eup %1656  ;;  %1670 = vrcp.f32 %v1311_v18 }
 0x3df   :  { %v1313_v9 = vadd.f32 1.0, %v1657_v15 }
 0x3e0   :  { %v1659_v31 = vpop.eup %1658 }
 0x3e1   :  { %v1661_v43 = vpop.eup %1660  ;;  %1416 = vperm.xlu0 %1602, %v1659_v31   ;;  %1672 = vrcp.f32 %v1313_v9 }
 0x3e2   :  { %1381 = vperm.xlu1 %1603, %v1661_v43   ;;  %v1663_v60 = vpop.eup %1662 }
 0x3e3   :  { %v1665_v30 = vpop.eup %1664  ;;  %v1315_v14 = vadd.f32 1.0, %v1663_v60 }
 0x3e5   :  { %1674 = vrcp.f32 %v1315_v14 }
 0x3e6   :  { %v1667_v20 = vpop.eup %1666  ;;  %1386 = vperm.xlu1 %1603, %v1665_v30  }
 0x3e7   :  { %1426 = vperm.xlu0 %1602, %v1667_v20   ;;  %v1669_v22 = vpop.eup %1668 }
 0x3e8   :  { %v1671_v56 = vpop.eup %1670 }
 0x3ea   :  { %1391 = vperm.xlu1 %1603, %v1669_v22  }
 0x3eb   :  { %v1673_v39 = vpop.eup %1672 }
 0x3ee   :  { %1401 = vperm.xlu1 %1603, %v1671_v56  }
 0x3ef   :  { %v1675_v0 = vpop.eup %1674 }
 0x3f2   :  { %1411 = vperm.xlu1 %1603, %v1673_v39  }
 0x3f6   :  { %1421 = vperm.xlu1 %1603, %v1675_v0  }
 0x449   :  { %v1352_v52 = vpop.permute.xlu0 %1351 }
 0x44a   :  { %1429 = vst [vmem:[#allocation9] sm:$0xff] %v1352_v52 }
 0x44d   :  { %v1357_v28 = vpop.permute.xlu1 %1356 }
 0x44e   :  { %1430 = vst [vmem:[#allocation9 + $0x8] sm:$0xff] %v1357_v28 }
 0x451   :  { %v1362_v5 = vpop.permute.xlu1 %1361 }
 0x452   :  { %1431 = vst [vmem:[#allocation9 + $0x10] sm:$0xff] %v1362_v5 }
 0x455   :  { %v1367_v59 = vpop.permute.xlu1 %1366 }
 0x456   :  { %1432 = vst [vmem:[#allocation9 + $0x18] sm:$0xff] %v1367_v59 }
 0x458   :  { %v1397_v10 = vpop.permute.xlu0 %1396 }
 0x459   :  { %v1372_v8 = vpop.permute.xlu1 %1371  ;;  %1438 = vst [vmem:[#allocation9 + $0x48] sm:$0xff] %v1397_v10 }
 0x45a   :  { %1433 = vst [vmem:[#allocation9 + $0x20] sm:$0xff] %v1372_v8 }
 0x45c   :  { %v1407_v49 = vpop.permute.xlu0 %1406 }
 0x45d   :  { %v1377_v26 = vpop.permute.xlu1 %1376  ;;  %1440 = vst [vmem:[#allocation9 + $0x58] sm:$0xff] %v1407_v49 }
 0x45e   :  { %1434 = vst [vmem:[#allocation9 + $0x28] sm:$0xff] %v1377_v26 }
 0x460   :  { %v1417_v25 = vpop.permute.xlu0 %1416 }
 0x461   :  { %v1382_v47 = vpop.permute.xlu1 %1381  ;;  %1442 = vst [vmem:[#allocation9 + $0x68] sm:$0xff] %v1417_v25 }
 0x462   :  { %1435 = vst [vmem:[#allocation9 + $0x30] sm:$0xff] %v1382_v47 }
 0x465   :  { %v1387_v24 = vpop.permute.xlu1 %1386 }
 0x466   :  { %1436 = vst [vmem:[#allocation9 + $0x38] sm:$0xff] %v1387_v24  ;;  %v1427_v23 = vpop.permute.xlu0 %1426 }
 0x467   :  { %1444 = vst [vmem:[#allocation9 + $0x78] sm:$0xff] %v1427_v23 }
 0x469   :  { %v1392_v53 = vpop.permute.xlu1 %1391 }
 0x46a   :  { %1437 = vst [vmem:[#allocation9 + $0x40] sm:$0xff] %v1392_v53 }
 0x46d   :  { %v1402_v12 = vpop.permute.xlu1 %1401 }
 0x46e   :  { %1439 = vst [vmem:[#allocation9 + $0x50] sm:$0xff] %v1402_v12 }
 0x471   :  { %v1412_v42 = vpop.permute.xlu1 %1411 }
 0x472   :  { %1441 = vst [vmem:[#allocation9 + $0x60] sm:$0xff] %v1412_v42 }
 0x475   :  { %v1422_v58 = vpop.permute.xlu1 %1421 }
 0x476   :  { %1443 = vst [vmem:[#allocation9 + $0x70] sm:$0xff] %v1422_v58 }
 0x477   :  { %1753 = shalt.err (!%p1750_p0)
}
 0x478   :  { %s1754_s13 = scalar_lea.hbm %s2475_s9, 2048 }
 0x479   :  { %p1755_p1 = scmp.ne.s32.totalorder %s2475_s9, %s1754_s13  ;;  %p1758_p2 = scmp.lt.u32.totalorder %s1754_s13, %s2475_s9 }
 0x47b   :  { %p1760_p3 = pnand %p1758_p2, %p1755_p1 }
 0x47d   :  { %1763 = shalt.err (!%p1760_p3)
}
 0x47e   :  { %s1778_s17 = smov 128   ;;  %s1779_s18 = smov 8  }
 0x47f   :  { %1456 = dma.vmem_to_hbm [thread:$0]  %s1451_s29, 2048, %s2475_s9, [#allocation5], %s1778_s17, %s1778_s17, %s1779_s18  }
 0x480   :  { %1768 = dma.done.wait [#allocation5], 2048  }
 0x481   :  { %1769 = vsyncadd [#allocation5], 4294965248 }
 0x482   :  { %1460 = vsyncpa [#allocation4], 1 }
 0x483   :  { %1461 = vsyncpa [#allocation7], 1 }
 0x484   :  { %1462 = vsyncpa [#allocation5], 1 }

</bundles_post_ra>
